<compile_context>
chip_gen: v5e
topology: v5e:2x2
jax: 0.10.0
libtpu: 0.0.40
codegen_flags: <defaults>
</compile_context>

<pallas_src>
import jax
import jax.numpy as jnp
from jax.experimental import pallas as pl
from jax.experimental.pallas import tpu as pltpu

IN_FEATURES = 768
OUT_FEATURES = 2


def _linear_kernel(x_ref, w_ref, b_ref, o_ref):
    # x_ref: (TM, K), w_ref: (K, N), b_ref: (1, N), o_ref: (TM, N)
    acc = jnp.dot(x_ref[...], w_ref[...], preferred_element_type=jnp.float32)
    o_ref[...] = (acc + b_ref[...]).astype(o_ref.dtype)


def _num_row_blocks():
    """2 row-blocks on v7x (2 TensorCores/chip), otherwise 1 full-array block."""
    try:
        kind = jax.devices()[0].device_kind.lower()
    except Exception:
        return 1
    return 2 if "v7" in kind else 1


def linear_pallas(x, weight, bias):
    """x: (B, S, 768) f32; weight: (2, 768) f32; bias: (2,) f32 -> (B, S, 2)."""
    B, S, K = x.shape
    N = weight.shape[0]
    assert K == IN_FEATURES and N == OUT_FEATURES
    M = B * S

    x2d = x.reshape(M, K)          # (384, 768)
    w_kn = weight.T                # (768, 2) -- real weight, no lane padding
    b_row = bias.reshape(1, N)     # (1, 2)

    n_blocks = _num_row_blocks()
    if M % n_blocks != 0 or (M // n_blocks) % 8 != 0:
        n_blocks = 1
    tm = M // n_blocks

    out2d = pl.pallas_call(
        _linear_kernel,
        out_shape=jax.ShapeDtypeStruct((M, N), x.dtype),
        grid=(n_blocks,),
        in_specs=[
            pl.BlockSpec((tm, K), lambda i: (i, 0)),
            pl.BlockSpec((K, N), lambda i: (0, 0)),
            pl.BlockSpec((1, N), lambda i: (0, 0)),
        ],
        out_specs=pl.BlockSpec((tm, N), lambda i: (i, 0)),
        compiler_params=pltpu.CompilerParams(
            dimension_semantics=("parallel",),
        ),
    )(x2d, w_kn, b_row)

    return out2d.reshape(B, S, N)


if __name__ == "__main__":
    key = jax.random.PRNGKey(0)
    kx, kw, kb = jax.random.split(key, 3)

    # Shapes implied by the module's forward: x (1, 384, 768), Linear(768 -> 2).
    x = jax.random.normal(kx, (1, 384, IN_FEATURES), dtype=jnp.float32)
    bound = 1.0 / (IN_FEATURES ** 0.5)
    weight = jax.random.uniform(
        kw, (OUT_FEATURES, IN_FEATURES), minval=-bound, maxval=bound, dtype=jnp.float32
    )
    bias = jax.random.uniform(
        kb, (OUT_FEATURES,), minval=-bound, maxval=bound, dtype=jnp.float32
    )

    out = linear_pallas(x, weight, bias)
    out = jax.block_until_ready(out)

    # Reference check against plain JAX (same math as torch's Linear).
    ref = jnp.einsum("bsk,nk->bsn", x, weight) + bias
    assert out.shape == (1, 384, OUT_FEATURES), out.shape
    assert jnp.allclose(out, ref, atol=1e-4, rtol=1e-4), "mismatch vs reference"

    print("KERNEL_OK")
</pallas_src>

<mosaic_0001>
module attributes {stable_mosaic.version = 11 : i64} {
  func.func @_linear_kernel(%arg0: i32, %arg1: memref<384x768xf32, #tpu.memory_space<vmem>>, %arg2: memref<768x2xf32, #tpu.memory_space<vmem>>, %arg3: memref<1x2xf32, #tpu.memory_space<vmem>>, %arg4: memref<384x2xf32, #tpu.memory_space<vmem>>) attributes {dimension_semantics = [#tpu.dimension_semantics<parallel>], iteration_bounds = array<i64: 1>, scalar_prefetch = 0 : i64, scratch_operands = 0 : i64, tpu.core_type = #tpu.core_type<tc>, window_params = [{transform_indices = @transform_0, window_bounds = array<i64: 384, 768>}, {pipeline_mode = #tpu.pipeline_mode<synchronous>, transform_indices = @transform_1, window_bounds = array<i64: 768, 2>}, {pipeline_mode = #tpu.pipeline_mode<synchronous>, transform_indices = @transform_2, window_bounds = array<i64: 1, 2>}, {transform_indices = @transform_3, window_bounds = array<i64: 384, 2>}]} {
    %c0 = arith.constant 0 : index
    %c0_0 = arith.constant 0 : index
    %0 = vector.load %arg1[%c0, %c0_0] : memref<384x768xf32, #tpu.memory_space<vmem>>, vector<384x768xf32>
    %c0_1 = arith.constant 0 : index
    %c0_2 = arith.constant 0 : index
    %1 = vector.load %arg2[%c0_1, %c0_2] : memref<768x2xf32, #tpu.memory_space<vmem>>, vector<768x2xf32>
    %cst = arith.constant dense<0.000000e+00> : vector<384x2xf32>
    %2 = tpu.matmul %0, %1, %cst {dimension_numbers = #tpu.dot_dimension_numbers<[1], [0], [0], [1], [0, 0, 1, 1], [], []>} : vector<384x768xf32>, vector<768x2xf32>, vector<384x2xf32> -> vector<384x2xf32>
    %c0_3 = arith.constant 0 : index
    %c0_4 = arith.constant 0 : index
    %3 = vector.load %arg3[%c0_3, %c0_4] : memref<1x2xf32, #tpu.memory_space<vmem>>, vector<1x2xf32>
    %4 = vector.broadcast %3 : vector<1x2xf32> to vector<384x2xf32>
    %5 = arith.addf %2, %4 : vector<384x2xf32>
    %c0_5 = arith.constant 0 : index
    %c0_6 = arith.constant 0 : index
    %6 = vector.load %arg4[%c0_5, %c0_6] : memref<384x2xf32, #tpu.memory_space<vmem>>, vector<384x2xf32>
    tpu.vector_store %arg4[%c0_5, %c0_6], %5 {strides = array<i32>} : memref<384x2xf32, #tpu.memory_space<vmem>>, vector<384x2xf32>,
    return
  }
  func.func @transform_0(%arg0: i32) -> (i32, i32) {
    %c0_i32 = arith.constant 0 : i32
    %c0_i32_0 = arith.constant 0 : i32
    return %arg0, %c0_i32 : i32, i32
  }
  func.func @transform_1(%arg0: i32) -> (i32, i32) {
    %c0_i32 = arith.constant 0 : i32
    %c0_i32_0 = arith.constant 0 : i32
    %c0_i32_1 = arith.constant 0 : i32
    return %c0_i32, %c0_i32_0 : i32, i32
  }
  func.func @transform_2(%arg0: i32) -> (i32, i32) {
    %c0_i32 = arith.constant 0 : i32
    %c0_i32_0 = arith.constant 0 : i32
    %c0_i32_1 = arith.constant 0 : i32
    return %c0_i32, %c0_i32_0 : i32, i32
  }
  func.func @transform_3(%arg0: i32) -> (i32, i32) {
    %c0_i32 = arith.constant 0 : i32
    %c0_i32_0 = arith.constant 0 : i32
    return %arg0, %c0_i32 : i32, i32
  }
}

</mosaic_0001>

<bundles_post_ra>
// kernel: tpu_custom_call.1
= control target key start
LH: loop header
LB: loop body
LE: loop exit
PB: predicated region body
PF: predicated region fallthrough
CT: control target
= control target key end

     0   :  { %8 = vsyncpa [#allocation3], 0  ;;  %s2321_s0 = inlined_call_operand.hbm [shape: f32[384,768], index: 0, kind: input, shape index: {}]   ;;  %s2322_s1 = inlined_call_operand.vmem [shape: f32[768,2], index: 1, kind: input, shape index: {}]   ;;  %s2323_s2 = inlined_call_operand.hbm [shape: f32[1,2], index: 2, kind: input, shape index: {}]   ;;  %s2324_s3 = inlined_call_operand.vmem [shape: f32[384,2], index: 3, kind: output, shape index: {}]  }
   0x1   :  { %s14_s14 = sshll.u32 %s2321_s0, 4  ;;  %s15_s14 = int_to_ptr.hbm [resolvable:$true] %s14_s14 }
   0x2   :  { %9 = vsyncpa [#allocation5], 0  ;;  %s1543_s15 = smov [#allocation2]   ;;  %s30_s19 = sshll.u32 %s2323_s2, 4  ;;  %s31_s19 = int_to_ptr.hbm [resolvable:$true] %s30_s19 }
   0x3   :  { %s16_s16 = sshll.u32 %s1543_s15, 4  ;;  %s1544_s20 = smov 768   ;;  %s17_s16 = int_to_ptr.vmem [resolvable:$true] %s16_s16 }
   0x4   :  { %s1545_s21 = smov 48   ;;  %s1546_s22 = smov [#allocation4]  }
   0x5   :  { %22 = dma.hbm_to_vmem [thread:$0]  %s15_s14, 36864, %s17_s16, [#allocation3], %s1544_s20, %s1544_s20, %s1545_s21  }
   0x6   :  { %s32_s23 = sshll.u32 %s1546_s22, 4  ;;  %s33_s23 = int_to_ptr.vmem [resolvable:$true] %s32_s23 }
   0x7   :  { %35 = dma.hbm_to_vmem [thread:$0]  %s31_s19, 16, %s33_s23, [#allocation5]  }
   0x8   :  { %1539 = dma.done.wait [#allocation3], 36864  }
   0x9   :  { %1540 = vsyncadd [#allocation3], 4294930432 }
   0xa   :  { %1541 = dma.done.wait [#allocation5], 16  }
   0xb   :  { %1542 = vsyncadd [#allocation5], 4294967280  ;;  %v347_v0 = vld [vmem:[%s2322_s1 + $0x78] sm:$0xff]  ;;  %v346_v1 = vld [vmem:[%s2322_s1 + $0x70] sm:$0xff]  ;;  %vm1398_vm0 = vcmask 15360  }
   0xc   :  { %v363_v2 = vld [vmem:[%s2322_s1 + $0xf8] sm:$0xff]  ;;  %1453 = vmatpush.msra.mxu2 %v347_v0  ;;  %v362_v3 = vld [vmem:[%s2322_s1 + $0xf0] sm:$0xff]  ;;  %v345_v4 = vld [vmem:[%s2322_s1 + $0x68] sm:$0xff]  ;;  %432 = vmatpush.msra.mxu0 %v347_v0 }
   0xd   :  { %1469 = vmatpush.msra.mxu3 %v363_v2  ;;  %v361_v5 = vld [vmem:[%s2322_s1 + $0xe8] sm:$0xff]  ;;  %593 = vmatpush.msra.mxu1 %v363_v2  ;;  %v344_v6 = vld [vmem:[%s2322_s1 + $0x60] sm:$0xff]  ;;  %v343_v8 = vld [vmem:[%s2322_s1 + $0x58] sm:$0xff] }
   0xe   :  { %1454 = vmatpush.msra.mxu2 %v346_v1  ;;  %v360_v7 = vld [vmem:[%s2322_s1 + $0xe0] sm:$0xff]  ;;  %433 = vmatpush.msra.mxu0 %v346_v1  ;;  %v359_v9 = vld [vmem:[%s2322_s1 + $0xd8] sm:$0xff]  ;;  %v342_v10 = vld [vmem:[%s2322_s1 + $0x50] sm:$0xff] }
   0xf   :  { %1470 = vmatpush.msra.mxu3 %v362_v3  ;;  %594 = vmatpush.msra.mxu1 %v362_v3  ;;  %v358_v11 = vld [vmem:[%s2322_s1 + $0xd0] sm:$0xff]  ;;  %v341_v12 = vld [vmem:[%s2322_s1 + $0x48] sm:$0xff]  ;;  %v340_v14 = vld [vmem:[%s2322_s1 + $0x40] sm:$0xff] }
  0x10   :  { %1455 = vmatpush.msra.mxu2 %v345_v4  ;;  %434 = vmatpush.msra.mxu0 %v345_v4  ;;  %v357_v13 = vld [vmem:[%s2322_s1 + $0xc8] sm:$0xff]  ;;  %v356_v15 = vld [vmem:[%s2322_s1 + $0xc0] sm:$0xff]  ;;  %v339_v16 = vld [vmem:[%s2322_s1 + $0x38] sm:$0xff] }
  0x11   :  { %1471 = vmatpush.msra.mxu3 %v361_v5  ;;  %595 = vmatpush.msra.mxu1 %v361_v5  ;;  %v355_v17 = vld [vmem:[%s2322_s1 + $0xb8] sm:$0xff]  ;;  %v338_v18 = vld [vmem:[%s2322_s1 + $0x30] sm:$0xff]  ;;  %v337_v20 = vld [vmem:[%s2322_s1 + $0x28] sm:$0xff] }
  0x12   :  { %1456 = vmatpush.msra.mxu2 %v344_v6  ;;  %435 = vmatpush.msra.mxu0 %v344_v6  ;;  %v354_v19 = vld [vmem:[%s2322_s1 + $0xb0] sm:$0xff]  ;;  %v353_v21 = vld [vmem:[%s2322_s1 + $0xa8] sm:$0xff]  ;;  %v336_v22 = vld [vmem:[%s2322_s1 + $0x20] sm:$0xff] }
  0x13   :  { %1472 = vmatpush.msra.mxu3 %v360_v7  ;;  %596 = vmatpush.msra.mxu1 %v360_v7  ;;  %v352_v23 = vld [vmem:[%s2322_s1 + $0xa0] sm:$0xff]  ;;  %v335_v24 = vld [vmem:[%s2322_s1 + $0x18] sm:$0xff]  ;;  %v334_v26 = vld [vmem:[%s2322_s1 + $0x10] sm:$0xff] }
  0x14   :  { %1457 = vmatpush.msra.mxu2 %v343_v8  ;;  %436 = vmatpush.msra.mxu0 %v343_v8  ;;  %v351_v25 = vld [vmem:[%s2322_s1 + $0x98] sm:$0xff]  ;;  %v350_v27 = vld [vmem:[%s2322_s1 + $0x90] sm:$0xff]  ;;  %v333_v28 = vld [vmem:[%s2322_s1 + $0x8] sm:$0xff] }
  0x15   :  { %1473 = vmatpush.msra.mxu3 %v359_v9  ;;  %597 = vmatpush.msra.mxu1 %v359_v9  ;;  %v349_v29 = vld [vmem:[%s2322_s1 + $0x88] sm:$0xff]  ;;  %v332_v30 = vld [vmem:[%s2322_s1] sm:$0xff]  ;;  %v379_v34 = vld [vmem:[%s2322_s1 + $0x178] sm:$0xff] }
  0x16   :  { %1458 = vmatpush.msra.mxu2 %v342_v10  ;;  %437 = vmatpush.msra.mxu0 %v342_v10  ;;  %v348_v31 = vld [vmem:[%s2322_s1 + $0x80] sm:$0xff]  ;;  %v189_v33 = vld [vmem:[#allocation2 + $0x488] sm:$0xff]  ;;  %v395_v35 = vld [vmem:[%s2322_s1 + $0x1f8] sm:$0xff] }
  0x17   :  { %1474 = vmatpush.msra.mxu3 %v358_v11  ;;  %598 = vmatpush.msra.mxu1 %v358_v11  ;;  %v188_v32 = vld [vmem:[#allocation2 + $0x480] sm:$0xff]  ;;  %v45_v37 = vld [vmem:[#allocation2 + $0x8] sm:$0xff]  ;;  %v411_v38 = vld [vmem:[%s2322_s1 + $0x278] sm:$0xff] }
  0x18   :  { %1459 = vmatpush.msra.mxu2 %v341_v12  ;;  %438 = vmatpush.msra.mxu0 %v341_v12  ;;  %v44_v36 = vld [vmem:[#allocation2] sm:$0xff]  ;;  %v378_v39 = vld [vmem:[%s2322_s1 + $0x170] sm:$0xff]  ;;  %v427_v40 = vld [vmem:[%s2322_s1 + $0x2f8] sm:$0xff] }
  0x19   :  { %1475 = vmatpush.msra.mxu3 %v357_v13  ;;  %599 = vmatpush.msra.mxu1 %v357_v13  ;;  %v394_v41 = vld [vmem:[%s2322_s1 + $0x1f0] sm:$0xff]  ;;  %v377_v43 = vld [vmem:[%s2322_s1 + $0x168] sm:$0xff]  ;;  %v195_v47 = vld [vmem:[#allocation2 + $0x4b8] sm:$0xff] }
  0x1a   :  { %1460 = vmatpush.msra.mxu2 %v340_v14  ;;  %439 = vmatpush.msra.mxu0 %v340_v14  ;;  %v410_v42 = vld [vmem:[%s2322_s1 + $0x270] sm:$0xff]  ;;  %v393_v45 = vld [vmem:[%s2322_s1 + $0x1e8] sm:$0xff]  ;;  %v376_v49 = vld [vmem:[%s2322_s1 + $0x160] sm:$0xff] }
  0x1b   :  { %1476 = vmatpush.msra.mxu3 %v356_v15  ;;  %600 = vmatpush.msra.mxu1 %v356_v15  ;;  %v426_v44 = vld [vmem:[%s2322_s1 + $0x2f0] sm:$0xff]  ;;  %v409_v48 = vld [vmem:[%s2322_s1 + $0x268] sm:$0xff]  ;;  %v392_v51 = vld [vmem:[%s2322_s1 + $0x1e0] sm:$0xff] }
  0x1c   :  { %1461 = vmatpush.msra.mxu2 %v339_v16  ;;  %440 = vmatpush.msra.mxu0 %v339_v16  ;;  %v194_v46 = vld [vmem:[#allocation2 + $0x4b0] sm:$0xff]  ;;  %v425_v50 = vld [vmem:[%s2322_s1 + $0x2e8] sm:$0xff]  ;;  %v51_v53 = vld [vmem:[#allocation2 + $0x38] sm:$0xff] }
  0x1d   :  { %1477 = vmatpush.msra.mxu3 %v355_v17  ;;  %601 = vmatpush.msra.mxu1 %v355_v17  ;;  %v50_v52 = vld [vmem:[#allocation2 + $0x30] sm:$0xff]  ;;  %v408_v54 = vld [vmem:[%s2322_s1 + $0x260] sm:$0xff]  ;;  %v201_v56 = vld [vmem:[#allocation2 + $0x4e8] sm:$0xff] }
  0x1e   :  { %1462 = vmatpush.msra.mxu2 %v338_v18  ;;  %441 = vmatpush.msra.mxu0 %v338_v18  ;;  %v200_v55 = vld [vmem:[#allocation2 + $0x4e0] sm:$0xff]  ;;  %v57_v58 = vld [vmem:[#allocation2 + $0x68] sm:$0xff]  ;;  %v375_v59 = vld [vmem:[%s2322_s1 + $0x158] sm:$0xff] }
  0x1f   :  { %1478 = vmatpush.msra.mxu3 %v354_v19  ;;  %602 = vmatpush.msra.mxu1 %v354_v19  ;;  %v56_v57 = vld [vmem:[#allocation2 + $0x60] sm:$0xff]  ;;  %v391_v61 = vld [vmem:[%s2322_s1 + $0x1d8] sm:$0xff]  ;;  %v206_v62 = vld [vmem:[#allocation2 + $0x510] sm:$0xff] }
  0x20   :  { %1463 = vmatpush.msra.mxu2 %v337_v20  ;;  %442 = vmatpush.msra.mxu0 %v337_v20  ;;  %v424_v60 = vld [vmem:[%s2322_s1 + $0x2e0] sm:$0xff]  ;;  %v207_v63 = vld [vmem:[#allocation2 + $0x518] sm:$0xff]  ;;  %v62_v0 = vld [vmem:[#allocation2 + $0x90] sm:$0xff] }
  0x21   :  { %1479 = vmatpush.msra.mxu3 %v353_v21  ;;  %603 = vmatpush.msra.mxu1 %v353_v21  ;;  %v63_v1 = vld [vmem:[#allocation2 + $0x98] sm:$0xff]  ;;  %v374_v3 = vld [vmem:[%s2322_s1 + $0x150] sm:$0xff]  ;;  %v212_v6 = vld [vmem:[#allocation2 + $0x540] sm:$0xff] }
  0x22   :  { %1464 = vmatpush.msra.mxu2 %v336_v22  ;;  %443 = vmatpush.msra.mxu0 %v336_v22  ;;  %v407_v2 = vld [vmem:[%s2322_s1 + $0x258] sm:$0xff]  ;;  %v390_v5 = vld [vmem:[%s2322_s1 + $0x1d0] sm:$0xff]  ;;  %v213_v7 = vld [vmem:[#allocation2 + $0x548] sm:$0xff] }
  0x23   :  { %1480 = vmatpush.msra.mxu3 %v352_v23  ;;  %604 = vmatpush.msra.mxu1 %v352_v23  ;;  %v423_v4 = vld [vmem:[%s2322_s1 + $0x2d8] sm:$0xff]  ;;  %v68_v8 = vld [vmem:[#allocation2 + $0xc0] sm:$0xff]  ;;  %v69_v9 = vld [vmem:[#allocation2 + $0xc8] sm:$0xff] }
  0x24   :  { %1465 = vmatpush.msra.mxu2 %v335_v24  ;;  %444 = vmatpush.msra.mxu0 %v335_v24  ;;  %v406_v10 = vld [vmem:[%s2322_s1 + $0x250] sm:$0xff]  ;;  %v219_v12 = vld [vmem:[#allocation2 + $0x578] sm:$0xff]  ;;  %v373_v15 = vld [vmem:[%s2322_s1 + $0x148] sm:$0xff] }
  0x25   :  { %1481 = vmatpush.msra.mxu3 %v351_v25  ;;  %605 = vmatpush.msra.mxu1 %v351_v25  ;;  %v218_v11 = vld [vmem:[#allocation2 + $0x570] sm:$0xff]  ;;  %v75_v14 = vld [vmem:[#allocation2 + $0xf8] sm:$0xff]  ;;  %v389_v17 = vld [vmem:[%s2322_s1 + $0x1c8] sm:$0xff] }
  0x26   :  { %1466 = vmatpush.msra.mxu2 %v334_v26  ;;  %445 = vmatpush.msra.mxu0 %v334_v26  ;;  %v74_v13 = vld [vmem:[#allocation2 + $0xf0] sm:$0xff]  ;;  %v224_v18 = vld [vmem:[#allocation2 + $0x5a0] sm:$0xff]  ;;  %v225_v19 = vld [vmem:[#allocation2 + $0x5a8] sm:$0xff] }
  0x27   :  { %1482 = vmatpush.msra.mxu3 %v350_v27  ;;  %606 = vmatpush.msra.mxu1 %v350_v27  ;;  %v422_v16 = vld [vmem:[%s2322_s1 + $0x2d0] sm:$0xff]  ;;  %v80_v20 = vld [vmem:[#allocation2 + $0x120] sm:$0xff]  ;;  %v81_v21 = vld [vmem:[#allocation2 + $0x128] sm:$0xff] }
  0x28   :  { %1467 = vmatpush.msra.mxu2 %v333_v28  ;;  %446 = vmatpush.msra.mxu0 %v333_v28  ;;  %v405_v22 = vld [vmem:[%s2322_s1 + $0x248] sm:$0xff]  ;;  %v372_v23 = vld [vmem:[%s2322_s1 + $0x140] sm:$0xff]  ;;  %v230_v26 = vld [vmem:[#allocation2 + $0x5d0] sm:$0xff] }
  0x29   :  { %1483 = vmatpush.msra.mxu3 %v349_v29  ;;  %607 = vmatpush.msra.mxu1 %v349_v29  ;;  %v421_v24 = vld [vmem:[%s2322_s1 + $0x2c8] sm:$0xff]  ;;  %v388_v25 = vld [vmem:[%s2322_s1 + $0x1c0] sm:$0xff]  ;;  %v231_v27 = vld [vmem:[#allocation2 + $0x5d8] sm:$0xff] }
  0x2a   :  { %1468 = vmatpush.msra.mxu2 %v332_v30  ;;  %447 = vmatpush.msra.mxu0 %v332_v30  ;;  %v86_v28 = vld [vmem:[#allocation2 + $0x150] sm:$0xff]  ;;  %v87_v29 = vld [vmem:[#allocation2 + $0x158] sm:$0xff]  ;;  %v404_v30 = vld [vmem:[%s2322_s1 + $0x240] sm:$0xff] }
  0x2b   :  { %1484 = vmatpush.msra.mxu3 %v348_v31  ;;  %520 = vmatmul.f32.vlgmr.msra.gmra.mxu2 %v188_v32  ;;  %v237_v32 = vld [vmem:[#allocation2 + $0x608] sm:$0xff] }
  0x2c   :  { %681 = vmatmul.f32.vlgmr.msra.gmra.mxu3 %v189_v33  ;;  %754 = vmatpush.msrb.mxu2 %v379_v34  ;;  %v92_v33 = vld [vmem:[#allocation2 + $0x180] sm:$0xff]  ;;  %v93_v34 = vld [vmem:[#allocation2 + $0x188] sm:$0xff] }
  0x2d   :  { %915 = vmatpush.msrb.mxu3 %v395_v35  ;;  %608 = vmatpush.msra.mxu1 %v348_v31  ;;  %v236_v31 = vld [vmem:[#allocation2 + $0x600] sm:$0xff]  ;;  %v371_v35 = vld [vmem:[%s2322_s1 + $0x138] sm:$0xff] }
  0x2e   :  { %448 = vmatmul.f32.vlgmr.msra.gmra.mxu0 %v44_v36  ;;  %609 = vmatmul.f32.vlgmr.msra.gmra.mxu1 %v45_v37  ;;  %v420_v36 = vld [vmem:[%s2322_s1 + $0x2c0] sm:$0xff]  ;;  %v387_v37 = vld [vmem:[%s2322_s1 + $0x1b8] sm:$0xff] }
  0x2f   :  { %1076 = vmatpush.msrb.mxu0 %v411_v38  ;;  %755 = vmatpush.msrb.mxu2 %v378_v39  ;;  %v242_v38 = vld [vmem:[#allocation2 + $0x630] sm:$0xff]  ;;  %v243_v39 = vld [vmem:[#allocation2 + $0x638] sm:$0xff] }
  0x30   :  { %1237 = vmatpush.msrb.mxu1 %v427_v40  ;;  %916 = vmatpush.msrb.mxu3 %v394_v41  ;;  %v98_v40 = vld [vmem:[#allocation2 + $0x1b0] sm:$0xff]  ;;  %v99_v41 = vld [vmem:[#allocation2 + $0x1b8] sm:$0xff] }
  0x31   :  { %1077 = vmatpush.msrb.mxu0 %v410_v42  ;;  %756 = vmatpush.msrb.mxu2 %v377_v43  ;;  %v403_v42 = vld [vmem:[%s2322_s1 + $0x238] sm:$0xff]  ;;  %v370_v43 = vld [vmem:[%s2322_s1 + $0x130] sm:$0xff] }
  0x32   :  { %1238 = vmatpush.msrb.mxu1 %v426_v44  ;;  %917 = vmatpush.msrb.mxu3 %v393_v45  ;;  %v419_v44 = vld [vmem:[%s2322_s1 + $0x2b8] sm:$0xff]  ;;  %v386_v45 = vld [vmem:[%s2322_s1 + $0x1b0] sm:$0xff] }
  0x33   :  { %523 = vmatmul.f32.gmra.mxu2 %v194_v46  ;;  %1078 = vmatpush.msrb.mxu0 %v409_v48  ;;  %v248_v46 = vld [vmem:[#allocation2 + $0x660] sm:$0xff] }
  0x34   :  { %684 = vmatmul.f32.gmra.mxu3 %v195_v47  ;;  %757 = vmatpush.msrb.mxu2 %v376_v49  ;;  %v249_v47 = vld [vmem:[#allocation2 + $0x668] sm:$0xff]  ;;  %v104_v48 = vld [vmem:[#allocation2 + $0x1e0] sm:$0xff] }
  0x35   :  { %1239 = vmatpush.msrb.mxu1 %v425_v50  ;;  %918 = vmatpush.msrb.mxu3 %v392_v51  ;;  %v105_v49 = vld [vmem:[#allocation2 + $0x1e8] sm:$0xff]  ;;  %v402_v50 = vld [vmem:[%s2322_s1 + $0x230] sm:$0xff] }
  0x36   :  { %451 = vmatmul.f32.gmra.mxu0 %v50_v52  ;;  %612 = vmatmul.f32.gmra.mxu1 %v51_v53  ;;  %v254_v51 = vld [vmem:[#allocation2 + $0x690] sm:$0xff]  ;;  %v255_v52 = vld [vmem:[#allocation2 + $0x698] sm:$0xff] }
  0x37   :  { %1079 = vmatpush.msrb.mxu0 %v408_v54  ;;  %758 = vmatpush.msrb.mxu2 %v375_v59  ;;  %v110_v53 = vld [vmem:[#allocation2 + $0x210] sm:$0xff]  ;;  %v111_v54 = vld [vmem:[#allocation2 + $0x218] sm:$0xff]  ;;  %v261_v59 = vld [vmem:[#allocation2 + $0x6c8] sm:$0xff] }
  0x38   :  { %1240 = vmatpush.msrb.mxu1 %v424_v60  ;;  %919 = vmatpush.msrb.mxu3 %v391_v61  ;;  %v116_v60 = vld [vmem:[#allocation2 + $0x240] sm:$0xff]  ;;  %v117_v61 = vld [vmem:[#allocation2 + $0x248] sm:$0xff] }
  0x39   :  { %1080 = vmatpush.msrb.mxu0 %v407_v2  ;;  %759 = vmatpush.msrb.mxu2 %v374_v3  ;;  %v267_v2 = vld [vmem:[#allocation2 + $0x6f8] sm:$0xff]  ;;  %v384_v3 = vld [vmem:[%s2322_s1 + $0x1a0] sm:$0xff] }
  0x3a   :  { %1241 = vmatpush.msrb.mxu1 %v423_v4  ;;  %920 = vmatpush.msrb.mxu3 %v390_v5  ;;  %v122_v4 = vld [vmem:[#allocation2 + $0x270] sm:$0xff]  ;;  %v123_v5 = vld [vmem:[#allocation2 + $0x278] sm:$0xff] }
  0x3b   :  { %526 = vmatmul.f32.gmra.mxu2 %v200_v55  ;;  %1081 = vmatpush.msrb.mxu0 %v406_v10  ;;  %v369_v55 = vld [vmem:[%s2322_s1 + $0x128] sm:$0xff] }
  0x3c   :  { %687 = vmatmul.f32.gmra.mxu3 %v201_v56  ;;  %760 = vmatpush.msrb.mxu2 %v373_v15  ;;  %v418_v56 = vld [vmem:[%s2322_s1 + $0x2b0] sm:$0xff]  ;;  %v129_v10 = vld [vmem:[#allocation2 + $0x2a8] sm:$0xff]  ;;  %v279_v15 = vld [vmem:[#allocation2 + $0x758] sm:$0xff] }
  0x3d   :  { %1242 = vmatpush.msrb.mxu1 %v422_v16  ;;  %921 = vmatpush.msrb.mxu3 %v389_v17  ;;  %v134_v16 = vld [vmem:[#allocation2 + $0x2d0] sm:$0xff]  ;;  %v135_v17 = vld [vmem:[#allocation2 + $0x2d8] sm:$0xff] }
  0x3e   :  { %454 = vmatmul.f32.gmra.mxu0 %v56_v57  ;;  %615 = vmatmul.f32.gmra.mxu1 %v57_v58  ;;  %v385_v57 = vld [vmem:[%s2322_s1 + $0x1a8] sm:$0xff]  ;;  %v260_v58 = vld [vmem:[#allocation2 + $0x6c0] sm:$0xff] }
  0x3f   :  { %1082 = vmatpush.msrb.mxu0 %v405_v22  ;;  %761 = vmatpush.msrb.mxu2 %v372_v23  ;;  %v285_v22 = vld [vmem:[#allocation2 + $0x788] sm:$0xff]  ;;  %v382_v23 = vld [vmem:[%s2322_s1 + $0x190] sm:$0xff] }
  0x40   :  { %1243 = vmatpush.msrb.mxu1 %v421_v24  ;;  %922 = vmatpush.msrb.mxu3 %v388_v25  ;;  %v1831_v24 = vld [vmem:[#allocation4] ss:$0 sm:$0xff] }
  0x41   :  { %1083 = vmatpush.msrb.mxu0 %v404_v30  ;;  %762 = vmatpush.msrb.mxu2 %v371_v35  ;;  %v398_v35 = vld [vmem:[%s2322_s1 + $0x210] sm:$0xff] }
  0x42   :  { %1244 = vmatpush.msrb.mxu1 %v420_v36  ;;  %923 = vmatpush.msrb.mxu3 %v387_v37  ;;  %v146_v36 = vld [vmem:[#allocation2 + $0x330] sm:$0xff] }
  0x43   :  { %529 = vmatmul.f32.gmra.mxu2 %v206_v62  ;;  %1084 = vmatpush.msrb.mxu0 %v403_v42  ;;  %v401_v62 = vld [vmem:[%s2322_s1 + $0x228] sm:$0xff] }
  0x44   :  { %690 = vmatmul.f32.gmra.mxu3 %v207_v63  ;;  %763 = vmatpush.msrb.mxu2 %v370_v43  ;;  %v368_v63 = vld [vmem:[%s2322_s1 + $0x120] sm:$0xff]  ;;  %v381_v42 = vld [vmem:[%s2322_s1 + $0x188] sm:$0xff] }
  0x45   :  { %1245 = vmatpush.msrb.mxu1 %v419_v44  ;;  %924 = vmatpush.msrb.mxu3 %v386_v45 }
  0x46   :  { %457 = vmatmul.f32.gmra.mxu0 %v62_v0  ;;  %618 = vmatmul.f32.gmra.mxu1 %v63_v1  ;;  %v417_v0 = vld [vmem:[%s2322_s1 + $0x2a8] sm:$0xff]  ;;  %v266_v1 = vld [vmem:[#allocation2 + $0x6f0] sm:$0xff] }
  0x47   :  { %1085 = vmatpush.msrb.mxu0 %v402_v50  ;;  %764 = vmatpush.msrb.mxu2 %v369_v55 }
  0x48   :  { %1246 = vmatpush.msrb.mxu1 %v418_v56  ;;  %925 = vmatpush.msrb.mxu3 %v385_v57  ;;  %v364_v57 = vld [vmem:[%s2322_s1 + $0x100] sm:$0xff] }
  0x49   :  { %1086 = vmatpush.msrb.mxu0 %v401_v62  ;;  %765 = vmatpush.msrb.mxu2 %v368_v63  ;;  %v380_v62 = vld [vmem:[%s2322_s1 + $0x180] sm:$0xff] }
  0x4a   :  { %1247 = vmatpush.msrb.mxu1 %v417_v0  ;;  %926 = vmatpush.msrb.mxu3 %v384_v3 }
  0x4b   :  { %532 = vmatmul.f32.gmra.mxu2 %v212_v6  ;;  %v272_v6 = vld [vmem:[#allocation2 + $0x720] sm:$0xff] }
  0x4c   :  { %693 = vmatmul.f32.gmra.mxu3 %v213_v7  ;;  %v273_v7 = vld [vmem:[#allocation2 + $0x728] sm:$0xff] }
  0x4e   :  { %460 = vmatmul.f32.gmra.mxu0 %v68_v8  ;;  %621 = vmatmul.f32.gmra.mxu1 %v69_v9  ;;  %v400_v8 = vld [vmem:[%s2322_s1 + $0x220] sm:$0xff] }
  0x4f   :  { %v128_v9 = vld [vmem:[#allocation2 + $0x2a0] sm:$0xff]  ;;  %1087 = vmatpush.msrb.mxu0 %v400_v8 }
  0x53   :  { %535 = vmatmul.f32.gmra.mxu2 %v218_v11  ;;  %v367_v11 = vld [vmem:[%s2322_s1 + $0x118] sm:$0xff] }
  0x54   :  { %696 = vmatmul.f32.gmra.mxu3 %v219_v12  ;;  %v416_v12 = vld [vmem:[%s2322_s1 + $0x2a0] sm:$0xff]  ;;  %766 = vmatpush.msrb.mxu2 %v367_v11 }
  0x55   :  { %1248 = vmatpush.msrb.mxu1 %v416_v12  ;;  %v164_v12 = vld [vmem:[#allocation2 + $0x3c0] sm:$0xff] }
  0x56   :  { %463 = vmatmul.f32.gmra.mxu0 %v74_v13  ;;  %624 = vmatmul.f32.gmra.mxu1 %v75_v14  ;;  %v383_v13 = vld [vmem:[%s2322_s1 + $0x198] sm:$0xff]  ;;  %v278_v14 = vld [vmem:[#allocation2 + $0x750] sm:$0xff] }
  0x57   :  { %927 = vmatpush.msrb.mxu3 %v383_v13  ;;  %v165_v13 = vld [vmem:[#allocation2 + $0x3c8] sm:$0xff] }
  0x59   :  { %928 = vmatpush.msrb.mxu3 %v382_v23  ;;  %v170_v23 = vld [vmem:[#allocation2 + $0x3f0] sm:$0xff] }
  0x5b   :  { %538 = vmatmul.f32.gmra.mxu2 %v224_v18  ;;  %v399_v18 = vld [vmem:[%s2322_s1 + $0x218] sm:$0xff]  ;;  %929 = vmatpush.msrb.mxu3 %v381_v42 }
  0x5c   :  { %699 = vmatmul.f32.gmra.mxu3 %v225_v19  ;;  %1088 = vmatpush.msrb.mxu0 %v399_v18  ;;  %v366_v19 = vld [vmem:[%s2322_s1 + $0x110] sm:$0xff] }
  0x5d   :  { %767 = vmatpush.msrb.mxu2 %v366_v19  ;;  %930 = vmatpush.msrb.mxu3 %v380_v62  ;;  %v314_v18 = vld [vmem:[#allocation2 + $0x870] sm:$0xff]  ;;  %v315_v19 = vld [vmem:[#allocation2 + $0x878] sm:$0xff] }
  0x5e   :  { %466 = vmatmul.f32.gmra.mxu0 %v80_v20  ;;  %627 = vmatmul.f32.gmra.mxu1 %v81_v21  ;;  %v415_v20 = vld [vmem:[%s2322_s1 + $0x298] sm:$0xff]  ;;  %v284_v21 = vld [vmem:[#allocation2 + $0x780] sm:$0xff] }
  0x5f   :  { %1249 = vmatpush.msrb.mxu1 %v415_v20  ;;  %1089 = vmatpush.msrb.mxu0 %v398_v35 }
  0x63   :  { %541 = vmatmul.f32.gmra.mxu2 %v230_v26 }
  0x64   :  { %702 = vmatmul.f32.gmra.mxu3 %v231_v27  ;;  %v140_v27 = vld [vmem:[#allocation2 + $0x300] sm:$0xff] }
  0x66   :  { %469 = vmatmul.f32.gmra.mxu0 %v86_v28  ;;  %630 = vmatmul.f32.gmra.mxu1 %v87_v29  ;;  %v141_v28 = vld [vmem:[#allocation2 + $0x308] sm:$0xff] }
  0x6b   :  { %544 = vmatmul.f32.gmra.mxu2 %v236_v31 }
  0x6c   :  { %705 = vmatmul.f32.gmra.mxu3 %v237_v32  ;;  %v290_v32 = vld [vmem:[#allocation2 + $0x7b0] sm:$0xff] }
  0x6e   :  { %472 = vmatmul.f32.gmra.mxu0 %v92_v33  ;;  %633 = vmatmul.f32.gmra.mxu1 %v93_v34  ;;  %v291_v33 = vld [vmem:[#allocation2 + $0x7b8] sm:$0xff] }
  0x73   :  { %547 = vmatmul.f32.gmra.mxu2 %v242_v38 }
  0x74   :  { %708 = vmatmul.f32.gmra.mxu3 %v243_v39  ;;  %v147_v39 = vld [vmem:[#allocation2 + $0x338] sm:$0xff] }
  0x76   :  { %475 = vmatmul.f32.gmra.mxu0 %v98_v40  ;;  %636 = vmatmul.f32.gmra.mxu1 %v99_v41  ;;  %v365_v40 = vld [vmem:[%s2322_s1 + $0x108] sm:$0xff]  ;;  %v414_v41 = vld [vmem:[%s2322_s1 + $0x290] sm:$0xff] }
  0x77   :  { %768 = vmatpush.msrb.mxu2 %v365_v40  ;;  %1250 = vmatpush.msrb.mxu1 %v414_v41  ;;  %v177_v40 = vld [vmem:[#allocation2 + $0x428] sm:$0xff] }
  0x79   :  { %769 = vmatpush.msrb.mxu2 %v364_v57  ;;  %v46_v57 = vld [vmem:[#allocation2 + $0x10] sm:$0xff] }
  0x7b   :  { %550 = vmatmul.f32.gmra.mxu2 %v248_v46  ;;  %v296_v46 = vld [vmem:[#allocation2 + $0x7e0] sm:$0xff] }
  0x7c   :  { %711 = vmatmul.f32.gmra.mxu3 %v249_v47  ;;  %v297_v47 = vld [vmem:[#allocation2 + $0x7e8] sm:$0xff] }
  0x7e   :  { %478 = vmatmul.f32.gmra.mxu0 %v104_v48  ;;  %639 = vmatmul.f32.gmra.mxu1 %v105_v49 }
  0x83   :  { %553 = vmatmul.f32.gmra.mxu2 %v254_v51  ;;  %v152_v51 = vld [vmem:[#allocation2 + $0x360] sm:$0xff] }
  0x84   :  { %714 = vmatmul.f32.gmra.mxu3 %v255_v52  ;;  %v153_v52 = vld [vmem:[#allocation2 + $0x368] sm:$0xff] }
  0x86   :  { %481 = vmatmul.f32.gmra.mxu0 %v110_v53  ;;  %642 = vmatmul.f32.gmra.mxu1 %v111_v54  ;;  %v397_v53 = vld [vmem:[%s2322_s1 + $0x208] sm:$0xff] }
  0x87   :  { %1090 = vmatpush.msrb.mxu0 %v397_v53  ;;  %v183_v53 = vld [vmem:[#allocation2 + $0x458] sm:$0xff] }
  0x8b   :  { %556 = vmatmul.f32.gmra.mxu2 %v260_v58  ;;  %v413_v58 = vld [vmem:[%s2322_s1 + $0x288] sm:$0xff] }
  0x8c   :  { %717 = vmatmul.f32.gmra.mxu3 %v261_v59  ;;  %v302_v59 = vld [vmem:[#allocation2 + $0x810] sm:$0xff]  ;;  %1251 = vmatpush.msrb.mxu1 %v413_v58  ;;  %v47_v58 = vld [vmem:[#allocation2 + $0x18] sm:$0xff] }
  0x8e   :  { %484 = vmatmul.f32.gmra.mxu0 %v116_v60  ;;  %645 = vmatmul.f32.gmra.mxu1 %v117_v61  ;;  %v303_v60 = vld [vmem:[#allocation2 + $0x818] sm:$0xff] }
  0x93   :  { %559 = vmatmul.f32.gmra.mxu2 %v266_v1  ;;  %v158_v1 = vld [vmem:[#allocation2 + $0x390] sm:$0xff] }
  0x94   :  { %720 = vmatmul.f32.gmra.mxu3 %v267_v2  ;;  %v159_v2 = vld [vmem:[#allocation2 + $0x398] sm:$0xff] }
  0x96   :  { %487 = vmatmul.f32.gmra.mxu0 %v122_v4  ;;  %648 = vmatmul.f32.gmra.mxu1 %v123_v5 }
  0x9b   :  { %562 = vmatmul.f32.gmra.mxu2 %v272_v6  ;;  %v308_v6 = vld [vmem:[#allocation2 + $0x840] sm:$0xff] }
  0x9c   :  { %723 = vmatmul.f32.gmra.mxu3 %v273_v7  ;;  %v309_v7 = vld [vmem:[#allocation2 + $0x848] sm:$0xff] }
  0x9e   :  { %490 = vmatmul.f32.gmra.mxu0 %v128_v9  ;;  %651 = vmatmul.f32.gmra.mxu1 %v129_v10  ;;  %v396_v9 = vld [vmem:[%s2322_s1 + $0x200] sm:$0xff] }
  0x9f   :  { %1091 = vmatpush.msrb.mxu0 %v396_v9 }
  0xa3   :  { %565 = vmatmul.f32.gmra.mxu2 %v278_v14  ;;  %v412_v14 = vld [vmem:[%s2322_s1 + $0x280] sm:$0xff] }
  0xa4   :  { %726 = vmatmul.f32.gmra.mxu3 %v279_v15  ;;  %1252 = vmatpush.msrb.mxu1 %v412_v14  ;;  %v54_v14 = vld [vmem:[#allocation2 + $0x50] sm:$0xff] }
  0xa6   :  { %493 = vmatmul.f32.gmra.mxu0 %v134_v16  ;;  %654 = vmatmul.f32.gmra.mxu1 %v135_v17 }
  0xab   :  { %568 = vmatmul.f32.gmra.mxu2 %v284_v21  ;;  %v1833_v25 = vpop.f32.mrf.mxu0  ;;  %v1835_v26 = vpop.f32.mrf.mxu1 }
  0xac   :  { %729 = vmatmul.f32.gmra.mxu3 %v285_v22 }
  0xae   :  { %v521_v29 = vpop.f32.mrf.mxu2  ;;  %496 = vmatmul.f32.gmra.mxu0 %v140_v27  ;;  %657 = vmatmul.f32.gmra.mxu1 %v141_v28  ;;  %v171_v27 = vld [vmem:[#allocation2 + $0x3f8] sm:$0xff] }
  0xaf   :  { %v682_v30 = vpop.f32.mrf.mxu3  ;;  %v522_v31 = vadd.f32 %v1831_v24, %v521_v29 }
  0xb1   :  { %v1838_v34 = vadd.f32 %v682_v30, %v522_v31  ;;  %v320_v31 = vld [vmem:[#allocation2 + $0x8a0] sm:$0xff] }
  0xb3   :  { %2325 = vst [vmem:[#allocation8_spill] sm:$0xff] %v1838_v34  ;;  %571 = vmatmul.f32.gmra.mxu2 %v290_v32  ;;  %v1843_v37 = vpop.f32.mrf.mxu0  ;;  %v1845_v38 = vpop.f32.mrf.mxu1  ;;  %v321_v32 = vld [vmem:[#allocation2 + $0x8a8] sm:$0xff] }
  0xb4   :  { %732 = vmatmul.f32.gmra.mxu3 %v291_v33 }
  0xb6   :  { %v524_v43 = vpop.f32.mrf.mxu2  ;;  %499 = vmatmul.f32.gmra.mxu0 %v146_v36  ;;  %660 = vmatmul.f32.gmra.mxu1 %v147_v39  ;;  %v176_v39 = vld [vmem:[#allocation2 + $0x420] sm:$0xff] }
  0xb7   :  { %v685_v44 = vpop.f32.mrf.mxu3  ;;  %v525_v45 = vadd.f32 %v1831_v24, %v524_v43 }
  0xb9   :  { %v1857_v48 = vadd.f32 %v685_v44, %v525_v45  ;;  %v326_v44 = vld [vmem:[#allocation2 + $0x8d0] sm:$0xff]  ;;  %v327_v45 = vld [vmem:[#allocation2 + $0x8d8] sm:$0xff] }
  0xbb   :  { %2326 = vst [vmem:[#allocation9_spill] sm:$0xff] %v1857_v48  ;;  %574 = vmatmul.f32.gmra.mxu2 %v296_v46  ;;  %v1859_v49 = vpop.f32.mrf.mxu0  ;;  %v1861_v50 = vpop.f32.mrf.mxu1 }
  0xbc   :  { %735 = vmatmul.f32.gmra.mxu3 %v297_v47 }
  0xbe   :  { %v527_v54 = vpop.f32.mrf.mxu2  ;;  %502 = vmatmul.f32.gmra.mxu0 %v152_v51  ;;  %663 = vmatmul.f32.gmra.mxu1 %v153_v52  ;;  %v182_v52 = vld [vmem:[#allocation2 + $0x450] sm:$0xff] }
  0xbf   :  { %v688_v55 = vpop.f32.mrf.mxu3  ;;  %v528_v56 = vadd.f32 %v1831_v24, %v527_v54 }
  0xc1   :  { %v1873_v61 = vadd.f32 %v688_v55, %v528_v56 }
  0xc3   :  { %2327 = vst [vmem:[#allocation10_spill] sm:$0xff] %v1873_v61  ;;  %577 = vmatmul.f32.gmra.mxu2 %v302_v59  ;;  %v1878_v63 = vpop.f32.mrf.mxu0  ;;  %v1880_v0 = vpop.f32.mrf.mxu1  ;;  %v145_v61 = vld [vmem:[#allocation2 + $0x328] sm:$0xff] }
  0xc4   :  { %738 = vmatmul.f32.gmra.mxu3 %v303_v60 }
  0xc6   :  { %v530_v3 = vpop.f32.mrf.mxu2  ;;  %505 = vmatmul.f32.gmra.mxu0 %v158_v1  ;;  %666 = vmatmul.f32.gmra.mxu1 %v159_v2  ;;  %v48_v1 = vld [vmem:[#allocation2 + $0x20] sm:$0xff]  ;;  %v49_v2 = vld [vmem:[#allocation2 + $0x28] sm:$0xff] }
  0xc7   :  { %v691_v4 = vpop.f32.mrf.mxu3  ;;  %v531_v5 = vadd.f32 %v1831_v24, %v530_v3 }
  0xc9   :  { %v1883_v8 = vadd.f32 %v691_v4, %v531_v5 }
  0xcb   :  { %2328 = vst [vmem:[#allocation11_spill] sm:$0xff] %v1883_v8  ;;  %580 = vmatmul.f32.gmra.mxu2 %v308_v6  ;;  %v1888_v10 = vpop.f32.mrf.mxu0  ;;  %v1890_v11 = vpop.f32.mrf.mxu1  ;;  %v52_v6 = vld [vmem:[#allocation2 + $0x40] sm:$0xff] }
  0xcc   :  { %741 = vmatmul.f32.gmra.mxu3 %v309_v7  ;;  %v53_v7 = vld [vmem:[#allocation2 + $0x48] sm:$0xff] }
  0xce   :  { %v533_v15 = vpop.f32.mrf.mxu2  ;;  %508 = vmatmul.f32.gmra.mxu0 %v164_v12  ;;  %669 = vmatmul.f32.gmra.mxu1 %v165_v13 }
  0xcf   :  { %v694_v16 = vpop.f32.mrf.mxu3  ;;  %v534_v17 = vadd.f32 %v1831_v24, %v533_v15  ;;  %v55_v15 = vld [vmem:[#allocation2 + $0x58] sm:$0xff] }
  0xd1   :  { %v1896_v20 = vadd.f32 %v694_v16, %v534_v17 }
  0xd3   :  { %2329 = vst [vmem:[#allocation12_spill] sm:$0xff] %v1896_v20  ;;  %583 = vmatmul.f32.gmra.mxu2 %v314_v18  ;;  %v1898_v21 = vpop.f32.mrf.mxu0  ;;  %v1900_v22 = vpop.f32.mrf.mxu1 }
  0xd4   :  { %744 = vmatmul.f32.gmra.mxu3 %v315_v19  ;;  %v58_v19 = vld [vmem:[#allocation2 + $0x70] sm:$0xff] }
  0xd6   :  { %v536_v28 = vpop.f32.mrf.mxu2  ;;  %511 = vmatmul.f32.gmra.mxu0 %v170_v23  ;;  %672 = vmatmul.f32.gmra.mxu1 %v171_v27  ;;  %v59_v23 = vld [vmem:[#allocation2 + $0x78] sm:$0xff] }
  0xd7   :  { %v697_v29 = vpop.f32.mrf.mxu3  ;;  %v537_v30 = vadd.f32 %v1831_v24, %v536_v28 }
  0xd9   :  { %v1903_v33 = vadd.f32 %v697_v29, %v537_v30  ;;  %v60_v30 = vld [vmem:[#allocation2 + $0x80] sm:$0xff] }
  0xdb   :  { %2330 = vst [vmem:[#allocation13_spill] sm:$0xff] %v1903_v33  ;;  %586 = vmatmul.f32.gmra.mxu2 %v320_v31  ;;  %v1905_v35 = vpop.f32.mrf.mxu0  ;;  %v1907_v36 = vpop.f32.mrf.mxu1  ;;  %v61_v31 = vld [vmem:[#allocation2 + $0x88] sm:$0xff] }
  0xdc   :  { %747 = vmatmul.f32.gmra.mxu3 %v321_v32 }
  0xde   :  { %v539_v41 = vpop.f32.mrf.mxu2  ;;  %514 = vmatmul.f32.gmra.mxu0 %v176_v39  ;;  %675 = vmatmul.f32.gmra.mxu1 %v177_v40 }
  0xdf   :  { %v700_v42 = vpop.f32.mrf.mxu3  ;;  %v540_v43 = vadd.f32 %v1831_v24, %v539_v41  ;;  %v64_v41 = vld [vmem:[#allocation2 + $0xa0] sm:$0xff] }
  0xe1   :  { %v1910_v46 = vadd.f32 %v700_v42, %v540_v43  ;;  %v65_v42 = vld [vmem:[#allocation2 + $0xa8] sm:$0xff] }
  0xe3   :  { %2331 = vst [vmem:[#allocation14_spill] sm:$0xff] %v1910_v46  ;;  %589 = vmatmul.f32.gmra.mxu2 %v326_v44  ;;  %v1912_v47 = vpop.f32.mrf.mxu0  ;;  %v1914_v51 = vpop.f32.mrf.mxu1 }
  0xe4   :  { %750 = vmatmul.f32.gmra.mxu3 %v327_v45 }
  0xe6   :  { %v542_v54 = vpop.f32.mrf.mxu2  ;;  %517 = vmatmul.f32.gmra.mxu0 %v182_v52  ;;  %678 = vmatmul.f32.gmra.mxu1 %v183_v53  ;;  %v66_v52 = vld [vmem:[#allocation2 + $0xb0] sm:$0xff]  ;;  %v67_v53 = vld [vmem:[#allocation2 + $0xb8] sm:$0xff] }
  0xe7   :  { %v703_v55 = vpop.f32.mrf.mxu3  ;;  %v543_v56 = vadd.f32 %v1831_v24, %v542_v54 }
  0xe9   :  { %v1917_v59 = vadd.f32 %v703_v55, %v543_v56 }
  0xeb   :  { %2332 = vst [vmem:[#allocation15_spill] sm:$0xff] %v1917_v59  ;;  %770 = vmatmul.f32.vlgmr.msrb.gmra.mxu2 %v46_v57  ;;  %v1919_v60 = vpop.f32.mrf.mxu0  ;;  %v1921_v62 = vpop.f32.mrf.mxu1  ;;  %v70_v57 = vld [vmem:[#allocation2 + $0xd0] sm:$0xff] }
  0xec   :  { %931 = vmatmul.f32.vlgmr.msrb.gmra.mxu3 %v47_v58  ;;  %v71_v58 = vld [vmem:[#allocation2 + $0xd8] sm:$0xff] }
  0xee   :  { %v545_v3 = vpop.f32.mrf.mxu2  ;;  %1092 = vmatmul.f32.vlgmr.msrb.gmra.mxu0 %v48_v1  ;;  %1253 = vmatmul.f32.vlgmr.msrb.gmra.mxu1 %v49_v2 }
  0xef   :  { %v706_v4 = vpop.f32.mrf.mxu3  ;;  %v546_v5 = vadd.f32 %v1831_v24, %v545_v3 }
  0xf1   :  { %v1924_v9 = vadd.f32 %v706_v4, %v546_v5  ;;  %v72_v4 = vld [vmem:[#allocation2 + $0xe0] sm:$0xff]  ;;  %v73_v5 = vld [vmem:[#allocation2 + $0xe8] sm:$0xff] }
  0xf3   :  { %2333 = vst [vmem:[#allocation16_spill] sm:$0xff] %v1924_v9  ;;  %773 = vmatmul.f32.gmra.mxu2 %v52_v6  ;;  %v1926_v12 = vpop.f32.mrf.mxu0  ;;  %v1928_v13 = vpop.f32.mrf.mxu1 }
  0xf4   :  { %934 = vmatmul.f32.gmra.mxu3 %v53_v7 }
  0xf6   :  { %v548_v16 = vpop.f32.mrf.mxu2  ;;  %1095 = vmatmul.f32.gmra.mxu0 %v54_v14  ;;  %1256 = vmatmul.f32.gmra.mxu1 %v55_v15  ;;  %v76_v15 = vld [vmem:[#allocation2 + $0x100] sm:$0xff] }
  0xf7   :  { %v709_v17 = vpop.f32.mrf.mxu3  ;;  %v549_v18 = vadd.f32 %v1831_v24, %v548_v16  ;;  %v77_v16 = vld [vmem:[#allocation2 + $0x108] sm:$0xff] }
  0xf9   :  { %v1931_v27 = vadd.f32 %v709_v17, %v549_v18 }
  0xfb   :  { %2334 = vst [vmem:[#allocation17_spill] sm:$0xff] %v1931_v27  ;;  %776 = vmatmul.f32.gmra.mxu2 %v58_v19  ;;  %v1933_v28 = vpop.f32.mrf.mxu0  ;;  %v1935_v29 = vpop.f32.mrf.mxu1 }
  0xfc   :  { %937 = vmatmul.f32.gmra.mxu3 %v59_v23  ;;  %v78_v23 = vld [vmem:[#allocation2 + $0x110] sm:$0xff] }
  0xfe   :  { %v551_v32 = vpop.f32.mrf.mxu2  ;;  %1098 = vmatmul.f32.gmra.mxu0 %v60_v30  ;;  %1259 = vmatmul.f32.gmra.mxu1 %v61_v31  ;;  %v79_v30 = vld [vmem:[#allocation2 + $0x118] sm:$0xff] }
  0xff   :  { %v712_v39 = vpop.f32.mrf.mxu3  ;;  %v552_v40 = vadd.f32 %v1831_v24, %v551_v32 }
 0x101   :  { %v1938_v43 = vadd.f32 %v712_v39, %v552_v40  ;;  %v82_v40 = vld [vmem:[#allocation2 + $0x130] sm:$0xff] }
 0x103   :  { %2335 = vst [vmem:[#allocation18_spill] sm:$0xff] %v1938_v43  ;;  %779 = vmatmul.f32.gmra.mxu2 %v64_v41  ;;  %v1940_v44 = vpop.f32.mrf.mxu0  ;;  %v1942_v45 = vpop.f32.mrf.mxu1  ;;  %v83_v41 = vld [vmem:[#allocation2 + $0x138] sm:$0xff] }
 0x104   :  { %940 = vmatmul.f32.gmra.mxu3 %v65_v42 }
 0x106   :  { %v554_v54 = vpop.f32.mrf.mxu2  ;;  %1101 = vmatmul.f32.gmra.mxu0 %v66_v52  ;;  %1262 = vmatmul.f32.gmra.mxu1 %v67_v53 }
 0x107   :  { %v715_v55 = vpop.f32.mrf.mxu3  ;;  %v555_v56 = vadd.f32 %v1831_v24, %v554_v54  ;;  %v84_v54 = vld [vmem:[#allocation2 + $0x140] sm:$0xff] }
 0x109   :  { %v1945_v1 = vadd.f32 %v715_v55, %v555_v56  ;;  %v85_v55 = vld [vmem:[#allocation2 + $0x148] sm:$0xff] }
 0x10b   :  { %2336 = vst [vmem:[#allocation19_spill] sm:$0xff] %v1945_v1  ;;  %782 = vmatmul.f32.gmra.mxu2 %v70_v57  ;;  %v1947_v2 = vpop.f32.mrf.mxu0  ;;  %v1949_v3 = vpop.f32.mrf.mxu1 }
 0x10c   :  { %943 = vmatmul.f32.gmra.mxu3 %v71_v58 }
 0x10e   :  { %v557_v6 = vpop.f32.mrf.mxu2  ;;  %1104 = vmatmul.f32.gmra.mxu0 %v72_v4  ;;  %1265 = vmatmul.f32.gmra.mxu1 %v73_v5  ;;  %v88_v4 = vld [vmem:[#allocation2 + $0x160] sm:$0xff]  ;;  %v89_v5 = vld [vmem:[#allocation2 + $0x168] sm:$0xff] }
 0x10f   :  { %v718_v7 = vpop.f32.mrf.mxu3  ;;  %v558_v14 = vadd.f32 %v1831_v24, %v557_v6 }
 0x111   :  { %v1952_v17 = vadd.f32 %v718_v7, %v558_v14 }
 0x113   :  { %2337 = vst [vmem:[#allocation20_spill] sm:$0xff] %v1952_v17  ;;  %785 = vmatmul.f32.gmra.mxu2 %v76_v15  ;;  %v1954_v18 = vpop.f32.mrf.mxu0  ;;  %v1956_v19 = vpop.f32.mrf.mxu1  ;;  %v90_v15 = vld [vmem:[#allocation2 + $0x170] sm:$0xff] }
 0x114   :  { %946 = vmatmul.f32.gmra.mxu3 %v77_v16  ;;  %v91_v16 = vld [vmem:[#allocation2 + $0x178] sm:$0xff] }
 0x116   :  { %v560_v31 = vpop.f32.mrf.mxu2  ;;  %1107 = vmatmul.f32.gmra.mxu0 %v78_v23  ;;  %1268 = vmatmul.f32.gmra.mxu1 %v79_v30 }
 0x117   :  { %v721_v32 = vpop.f32.mrf.mxu3  ;;  %v561_v39 = vadd.f32 %v1831_v24, %v560_v31 }
 0x119   :  { %v1959_v42 = vadd.f32 %v721_v32, %v561_v39  ;;  %v94_v32 = vld [vmem:[#allocation2 + $0x190] sm:$0xff]  ;;  %v95_v39 = vld [vmem:[#allocation2 + $0x198] sm:$0xff] }
 0x11b   :  { %2338 = vst [vmem:[#allocation21_spill] sm:$0xff] %v1959_v42  ;;  %788 = vmatmul.f32.gmra.mxu2 %v82_v40  ;;  %v1961_v52 = vpop.f32.mrf.mxu0  ;;  %v1963_v53 = vpop.f32.mrf.mxu1 }
 0x11c   :  { %949 = vmatmul.f32.gmra.mxu3 %v83_v41 }
 0x11e   :  { %v563_v56 = vpop.f32.mrf.mxu2  ;;  %1110 = vmatmul.f32.gmra.mxu0 %v84_v54  ;;  %1271 = vmatmul.f32.gmra.mxu1 %v85_v55  ;;  %v96_v55 = vld [vmem:[#allocation2 + $0x1a0] sm:$0xff] }
 0x11f   :  { %v724_v57 = vpop.f32.mrf.mxu3  ;;  %v564_v58 = vadd.f32 %v1831_v24, %v563_v56  ;;  %v97_v56 = vld [vmem:[#allocation2 + $0x1a8] sm:$0xff] }
 0x121   :  { %v1966_v6 = vadd.f32 %v724_v57, %v564_v58 }
 0x123   :  { %2339 = vst [vmem:[#allocation22_spill] sm:$0xff] %v1966_v6  ;;  %791 = vmatmul.f32.gmra.mxu2 %v88_v4  ;;  %v1968_v7 = vpop.f32.mrf.mxu0  ;;  %v1970_v14 = vpop.f32.mrf.mxu1 }
 0x124   :  { %952 = vmatmul.f32.gmra.mxu3 %v89_v5  ;;  %v100_v5 = vld [vmem:[#allocation2 + $0x1c0] sm:$0xff] }
 0x126   :  { %v566_v23 = vpop.f32.mrf.mxu2  ;;  %1113 = vmatmul.f32.gmra.mxu0 %v90_v15  ;;  %1274 = vmatmul.f32.gmra.mxu1 %v91_v16  ;;  %v101_v15 = vld [vmem:[#allocation2 + $0x1c8] sm:$0xff] }
 0x127   :  { %v727_v30 = vpop.f32.mrf.mxu3  ;;  %v567_v31 = vadd.f32 %v1831_v24, %v566_v23 }
 0x129   :  { %v1973_v40 = vadd.f32 %v727_v30, %v567_v31  ;;  %v102_v31 = vld [vmem:[#allocation2 + $0x1d0] sm:$0xff] }
 0x12b   :  { %2340 = vst [vmem:[#allocation23_spill] sm:$0xff] %v1973_v40  ;;  %794 = vmatmul.f32.gmra.mxu2 %v94_v32  ;;  %v1975_v41 = vpop.f32.mrf.mxu0  ;;  %v1977_v54 = vpop.f32.mrf.mxu1  ;;  %v103_v32 = vld [vmem:[#allocation2 + $0x1d8] sm:$0xff] }
 0x12c   :  { %955 = vmatmul.f32.gmra.mxu3 %v95_v39 }
 0x12e   :  { %v569_v57 = vpop.f32.mrf.mxu2  ;;  %1116 = vmatmul.f32.gmra.mxu0 %v96_v55  ;;  %1277 = vmatmul.f32.gmra.mxu1 %v97_v56  ;;  %v106_v56 = vld [vmem:[#allocation2 + $0x1f0] sm:$0xff] }
 0x12f   :  { %v730_v58 = vpop.f32.mrf.mxu3  ;;  %v570_v4 = vadd.f32 %v1831_v24, %v569_v57  ;;  %v107_v57 = vld [vmem:[#allocation2 + $0x1f8] sm:$0xff] }
 0x131   :  { %v1980_v16 = vadd.f32 %v730_v58, %v570_v4 }
 0x133   :  { %2341 = vst [vmem:[#allocation24_spill] sm:$0xff] %v1980_v16  ;;  %797 = vmatmul.f32.gmra.mxu2 %v100_v5  ;;  %v1982_v23 = vpop.f32.mrf.mxu0  ;;  %v1984_v30 = vpop.f32.mrf.mxu1  ;;  %v108_v5 = vld [vmem:[#allocation2 + $0x200] sm:$0xff] }
 0x134   :  { %958 = vmatmul.f32.gmra.mxu3 %v101_v15  ;;  %v109_v15 = vld [vmem:[#allocation2 + $0x208] sm:$0xff] }
 0x136   :  { %v572_v39 = vpop.f32.mrf.mxu2  ;;  %1119 = vmatmul.f32.gmra.mxu0 %v102_v31  ;;  %1280 = vmatmul.f32.gmra.mxu1 %v103_v32  ;;  %v112_v32 = vld [vmem:[#allocation2 + $0x220] sm:$0xff] }
 0x137   :  { %v733_v40 = vpop.f32.mrf.mxu3  ;;  %v573_v55 = vadd.f32 %v1831_v24, %v572_v39  ;;  %v113_v39 = vld [vmem:[#allocation2 + $0x228] sm:$0xff] }
 0x139   :  { %v1987_v6 = vadd.f32 %v733_v40, %v573_v55 }
 0x13b   :  { %2342 = vst [vmem:[#allocation25_spill] sm:$0xff] %v1987_v6  ;;  %800 = vmatmul.f32.gmra.mxu2 %v106_v56  ;;  %v1989_v58 = vpop.f32.mrf.mxu0  ;;  %v1991_v4 = vpop.f32.mrf.mxu1  ;;  %v114_v56 = vld [vmem:[#allocation2 + $0x230] sm:$0xff] }
 0x13c   :  { %961 = vmatmul.f32.gmra.mxu3 %v107_v57  ;;  %v115_v57 = vld [vmem:[#allocation2 + $0x238] sm:$0xff] }
 0x13e   :  { %v575_v16 = vpop.f32.mrf.mxu2  ;;  %1122 = vmatmul.f32.gmra.mxu0 %v108_v5  ;;  %1283 = vmatmul.f32.gmra.mxu1 %v109_v15  ;;  %v118_v15 = vld [vmem:[#allocation2 + $0x250] sm:$0xff] }
 0x13f   :  { %v736_v42 = vpop.f32.mrf.mxu3  ;;  %v576_v31 = vadd.f32 %v1831_v24, %v575_v16  ;;  %v119_v16 = vld [vmem:[#allocation2 + $0x258] sm:$0xff] }
 0x141   :  { %v1994_v17 = vadd.f32 %v736_v42, %v576_v31 }
 0x143   :  { %2343 = vst [vmem:[#allocation26_spill] sm:$0xff] %v1994_v17  ;;  %803 = vmatmul.f32.gmra.mxu2 %v112_v32  ;;  %v1996_v40 = vpop.f32.mrf.mxu0  ;;  %v1998_v55 = vpop.f32.mrf.mxu1  ;;  %v120_v32 = vld [vmem:[#allocation2 + $0x260] sm:$0xff] }
 0x144   :  { %964 = vmatmul.f32.gmra.mxu3 %v113_v39  ;;  %v121_v39 = vld [vmem:[#allocation2 + $0x268] sm:$0xff] }
 0x146   :  { %v578_v6 = vpop.f32.mrf.mxu2  ;;  %1125 = vmatmul.f32.gmra.mxu0 %v114_v56  ;;  %1286 = vmatmul.f32.gmra.mxu1 %v115_v57  ;;  %v124_v57 = vld [vmem:[#allocation2 + $0x280] sm:$0xff] }
 0x147   :  { %v739_v1 = vpop.f32.mrf.mxu3  ;;  %v579_v5 = vadd.f32 %v1831_v24, %v578_v6  ;;  %v125_v6 = vld [vmem:[#allocation2 + $0x288] sm:$0xff] }
 0x149   :  { %v2001_v43 = vadd.f32 %v739_v1, %v579_v5 }
 0x14b   :  { %2344 = vst [vmem:[#allocation27_spill] sm:$0xff] %v2001_v43  ;;  %806 = vmatmul.f32.gmra.mxu2 %v118_v15  ;;  %v2003_v42 = vpop.f32.mrf.mxu0  ;;  %v2005_v31 = vpop.f32.mrf.mxu1  ;;  %v126_v15 = vld [vmem:[#allocation2 + $0x290] sm:$0xff] }
 0x14c   :  { %967 = vmatmul.f32.gmra.mxu3 %v119_v16  ;;  %v127_v16 = vld [vmem:[#allocation2 + $0x298] sm:$0xff] }
 0x14e   :  { %v581_v17 = vpop.f32.mrf.mxu2  ;;  %1128 = vmatmul.f32.gmra.mxu0 %v120_v32  ;;  %1289 = vmatmul.f32.gmra.mxu1 %v121_v39  ;;  %v130_v39 = vld [vmem:[#allocation2 + $0x2b0] sm:$0xff] }
 0x14f   :  { %v742_v27 = vpop.f32.mrf.mxu3  ;;  %v582_v56 = vadd.f32 %v1831_v24, %v581_v17  ;;  %v131_v17 = vld [vmem:[#allocation2 + $0x2b8] sm:$0xff] }
 0x151   :  { %v2008_v9 = vadd.f32 %v742_v27, %v582_v56 }
 0x153   :  { %2345 = vst [vmem:[#allocation28_spill] sm:$0xff] %v2008_v9  ;;  %809 = vmatmul.f32.gmra.mxu2 %v124_v57  ;;  %v2010_v1 = vpop.f32.mrf.mxu0  ;;  %v2012_v5 = vpop.f32.mrf.mxu1  ;;  %v132_v57 = vld [vmem:[#allocation2 + $0x2c0] sm:$0xff] }
 0x154   :  { %970 = vmatmul.f32.gmra.mxu3 %v125_v6  ;;  %v133_v6 = vld [vmem:[#allocation2 + $0x2c8] sm:$0xff] }
 0x156   :  { %v584_v43 = vpop.f32.mrf.mxu2  ;;  %1131 = vmatmul.f32.gmra.mxu0 %v126_v15  ;;  %1292 = vmatmul.f32.gmra.mxu1 %v127_v16  ;;  %v136_v16 = vld [vmem:[#allocation2 + $0x2e0] sm:$0xff] }
 0x157   :  { %v745_v59 = vpop.f32.mrf.mxu3  ;;  %v585_v32 = vadd.f32 %v1831_v24, %v584_v43  ;;  %v137_v43 = vld [vmem:[#allocation2 + $0x2e8] sm:$0xff] }
 0x159   :  { %v2015_v46 = vadd.f32 %v745_v59, %v585_v32 }
 0x15b   :  { %2346 = vst [vmem:[#allocation29_spill] sm:$0xff] %v2015_v46  ;;  %812 = vmatmul.f32.gmra.mxu2 %v130_v39  ;;  %v2017_v27 = vpop.f32.mrf.mxu0  ;;  %v2019_v56 = vpop.f32.mrf.mxu1  ;;  %v138_v39 = vld [vmem:[#allocation2 + $0x2f0] sm:$0xff] }
 0x15c   :  { %973 = vmatmul.f32.gmra.mxu3 %v131_v17  ;;  %v139_v17 = vld [vmem:[#allocation2 + $0x2f8] sm:$0xff] }
 0x15e   :  { %v587_v9 = vpop.f32.mrf.mxu2  ;;  %1134 = vmatmul.f32.gmra.mxu0 %v132_v57  ;;  %1295 = vmatmul.f32.gmra.mxu1 %v133_v6  ;;  %v142_v6 = vld [vmem:[#allocation2 + $0x310] sm:$0xff] }
 0x15f   :  { %v748_v33 = vpop.f32.mrf.mxu3  ;;  %v588_v15 = vadd.f32 %v1831_v24, %v587_v9  ;;  %v143_v9 = vld [vmem:[#allocation2 + $0x318] sm:$0xff] }
 0x161   :  { %v2022_v20 = vadd.f32 %v748_v33, %v588_v15  ;;  %v450_v33 = vadd.f32 %v1831_v24, %v1833_v25  ;;  %v453_v25 = vadd.f32 %v1831_v24, %v1843_v37  ;;  %v154_v37 = vld [vmem:[#allocation2 + $0x370] sm:$0xff] }
 0x163   :  { %2347 = vst [vmem:[#allocation30_spill] sm:$0xff] %v2022_v20  ;;  %815 = vmatmul.f32.gmra.mxu2 %v136_v16  ;;  %v2024_v59 = vpop.f32.mrf.mxu0  ;;  %v2026_v32 = vpop.f32.mrf.mxu1  ;;  %v144_v20 = vld [vmem:[#allocation2 + $0x320] sm:$0xff]  ;;  %v611_v48 = vadd.f32 %v1835_v26, %v450_v33  ;;  %v614_v26 = vadd.f32 %v1845_v38, %v453_v25 }
 0x164   :  { %976 = vmatmul.f32.gmra.mxu3 %v137_v43  ;;  %2348 = vst [vmem:[#allocation31_spill] sm:$0xff] %v2024_v59  ;;  %v151_v59 = vld [vmem:[#allocation2 + $0x358] sm:$0xff] }
 0x165   :  { %2349 = vst [vmem:[#allocation32_spill] sm:$0xff] %v2026_v32  ;;  %v149_v32 = vld [vmem:[#allocation2 + $0x348] sm:$0xff] }
 0x166   :  { %v590_v46 = vpop.f32.mrf.mxu2  ;;  %1137 = vmatmul.f32.gmra.mxu0 %v138_v39  ;;  %1298 = vmatmul.f32.gmra.mxu1 %v139_v17  ;;  %v148_v17 = vld [vmem:[#allocation2 + $0x340] sm:$0xff] }
 0x167   :  { %v751_v8 = vpop.f32.mrf.mxu3  ;;  %v591_v57 = vadd.f32 %v1831_v24, %v590_v46 }
 0x169   :  { %v2031_v15 = vadd.f32 %v751_v8, %v591_v57 }
 0x16b   :  { %2350 = vst [vmem:[#allocation33_spill] sm:$0xff] %v2031_v15  ;;  %818 = vmatmul.f32.gmra.mxu2 %v142_v6  ;;  %v1093_v16 = vpop.f32.mrf.mxu0  ;;  %v1254_v43 = vpop.f32.mrf.mxu1  ;;  %v150_v15 = vld [vmem:[#allocation2 + $0x350] sm:$0xff] }
 0x16c   :  { %979 = vmatmul.f32.gmra.mxu3 %v143_v9 }
 0x16e   :  { %v771_v34 = vpop.f32.mrf.mxu2  ;;  %1140 = vmatmul.f32.gmra.mxu0 %v144_v20  ;;  %1301 = vmatmul.f32.gmra.mxu1 %v145_v61 }
 0x16f   :  { %v932_v39 = vpop.f32.mrf.mxu3  ;;  %v772_v46 = vadd.f32 %v771_v34, %v611_v48  ;;  %v155_v48 = vld [vmem:[#allocation2 + $0x378] sm:$0xff] }
 0x171   :  { %v933_v8 = vadd.f32 %v932_v39, %v772_v46  ;;  %v156_v46 = vld [vmem:[#allocation2 + $0x380] sm:$0xff] }
 0x173   :  { %v1094_v57 = vadd.f32 %v1093_v16, %v933_v8  ;;  %821 = vmatmul.f32.gmra.mxu2 %v148_v17  ;;  %v1096_v6 = vpop.f32.mrf.mxu0  ;;  %v1257_v9 = vpop.f32.mrf.mxu1 }
 0x174   :  { %982 = vmatmul.f32.gmra.mxu3 %v149_v32  ;;  %v456_v32 = vadd.f32 %v1831_v24, %v1859_v49 }
 0x175   :  { %v1255_v33 = vadd.f32 %v1254_v43, %v1094_v57  ;;  %v160_v57 = vld [vmem:[#allocation2 + $0x3a0] sm:$0xff] }
 0x176   :  { %v774_v20 = vpop.f32.mrf.mxu2  ;;  %1143 = vmatmul.f32.gmra.mxu0 %v150_v15  ;;  %1304 = vmatmul.f32.gmra.mxu1 %v151_v59  ;;  %v157_v15 = vld [vmem:[#allocation2 + $0x388] sm:$0xff]  ;;  %v617_v59 = vadd.f32 %v1861_v50, %v456_v32 }
 0x177   :  { %v935_v61 = vpop.f32.mrf.mxu3  ;;  %1399 = vst.msk [vmem:[%s2324_s3] sm:$0xff] %vm1398_vm0, %v1255_v33  ;;  %v775_v34 = vadd.f32 %v774_v20, %v614_v26  ;;  %v459_v26 = vadd.f32 %v1831_v24, %v1878_v63 }
 0x179   :  { %v936_v16 = vadd.f32 %v935_v61, %v775_v34  ;;  %v162_v61 = vld [vmem:[#allocation2 + $0x3b0] sm:$0xff]  ;;  %v163_v34 = vld [vmem:[#allocation2 + $0x3b8] sm:$0xff] }
 0x17b   :  { %v1097_v39 = vadd.f32 %v1096_v6, %v936_v16  ;;  %824 = vmatmul.f32.gmra.mxu2 %v154_v37  ;;  %v1099_v38 = vpop.f32.mrf.mxu0  ;;  %v1260_v43 = vpop.f32.mrf.mxu1  ;;  %v161_v6 = vld [vmem:[#allocation2 + $0x3a8] sm:$0xff]  ;;  %v620_v37 = vadd.f32 %v1880_v0, %v459_v26  ;;  %v172_v26 = vld [vmem:[#allocation2 + $0x400] sm:$0xff] }
 0x17c   :  { %985 = vmatmul.f32.gmra.mxu3 %v155_v48 }
 0x17d   :  { %v1258_v17 = vadd.f32 %v1257_v9, %v1097_v39  ;;  %v166_v39 = vld [vmem:[#allocation2 + $0x3d0] sm:$0xff] }
 0x17e   :  { %v777_v25 = vpop.f32.mrf.mxu2  ;;  %1146 = vmatmul.f32.gmra.mxu0 %v156_v46  ;;  %1307 = vmatmul.f32.gmra.mxu1 %v157_v15  ;;  %v462_v46 = vadd.f32 %v1831_v24, %v1888_v10 }
 0x17f   :  { %v938_v8 = vpop.f32.mrf.mxu3  ;;  %1400 = vst.msk [vmem:[%s2324_s3 + $0x8] sm:$0xff] %vm1398_vm0, %v1258_v17  ;;  %v778_v49 = vadd.f32 %v777_v25, %v617_v59  ;;  %v168_v17 = vld [vmem:[#allocation2 + $0x3e0] sm:$0xff]  ;;  %v169_v25 = vld [vmem:[#allocation2 + $0x3e8] sm:$0xff] }
 0x181   :  { %v939_v33 = vadd.f32 %v938_v8, %v778_v49  ;;  %v623_v8 = vadd.f32 %v1890_v11, %v462_v46  ;;  %v468_v46 = vadd.f32 %v1831_v24, %v1905_v35 }
 0x183   :  { %v1100_v20 = vadd.f32 %v1099_v38, %v939_v33  ;;  %827 = vmatmul.f32.gmra.mxu2 %v160_v57  ;;  %v1102_v50 = vpop.f32.mrf.mxu0  ;;  %v1263_v9 = vpop.f32.mrf.mxu1  ;;  %v167_v38 = vld [vmem:[#allocation2 + $0x3d8] sm:$0xff]  ;;  %v173_v33 = vld [vmem:[#allocation2 + $0x408] sm:$0xff] }
 0x184   :  { %988 = vmatmul.f32.gmra.mxu3 %v161_v6 }
 0x185   :  { %v1261_v48 = vadd.f32 %v1260_v43, %v1100_v20  ;;  %v465_v20 = vadd.f32 %v1831_v24, %v1898_v21 }
 0x186   :  { %v780_v32 = vpop.f32.mrf.mxu2  ;;  %1149 = vmatmul.f32.gmra.mxu0 %v162_v61  ;;  %1310 = vmatmul.f32.gmra.mxu1 %v163_v34  ;;  %v174_v34 = vld [vmem:[#allocation2 + $0x410] sm:$0xff] }
 0x187   :  { %v941_v16 = vpop.f32.mrf.mxu3  ;;  %1401 = vst.msk [vmem:[%s2324_s3 + $0x10] sm:$0xff] %vm1398_vm0, %v1261_v48  ;;  %v781_v63 = vadd.f32 %v780_v32, %v620_v37  ;;  %v175_v37 = vld [vmem:[#allocation2 + $0x418] sm:$0xff]  ;;  %v626_v48 = vadd.f32 %v1900_v22, %v465_v20 }
 0x189   :  { %v942_v15 = vadd.f32 %v941_v16, %v781_v63 }
 0x18b   :  { %v1103_v59 = vadd.f32 %v1102_v50, %v942_v15  ;;  %830 = vmatmul.f32.gmra.mxu2 %v166_v39  ;;  %v1105_v0 = vpop.f32.mrf.mxu0  ;;  %v1266_v43 = vpop.f32.mrf.mxu1  ;;  %v178_v39 = vld [vmem:[#allocation2 + $0x430] sm:$0xff] }
 0x18c   :  { %991 = vmatmul.f32.gmra.mxu3 %v167_v38  ;;  %v179_v38 = vld [vmem:[#allocation2 + $0x438] sm:$0xff] }
 0x18d   :  { %v1264_v49 = vadd.f32 %v1263_v9, %v1103_v59 }
 0x18e   :  { %v783_v57 = vpop.f32.mrf.mxu2  ;;  %1152 = vmatmul.f32.gmra.mxu0 %v168_v17  ;;  %1313 = vmatmul.f32.gmra.mxu1 %v169_v25  ;;  %v181_v17 = vld [vmem:[#allocation2 + $0x448] sm:$0xff]  ;;  %v629_v25 = vadd.f32 %v1907_v36, %v468_v46  ;;  %v192_v46 = vld [vmem:[#allocation2 + $0x4a0] sm:$0xff] }
 0x18f   :  { %v944_v6 = vpop.f32.mrf.mxu3  ;;  %1402 = vst.msk [vmem:[%s2324_s3 + $0x18] sm:$0xff] %vm1398_vm0, %v1264_v49  ;;  %v784_v10 = vadd.f32 %v783_v57, %v623_v8 }
 0x191   :  { %v945_v50 = vadd.f32 %v944_v6, %v784_v10  ;;  %v184_v6 = vld [vmem:[#allocation2 + $0x460] sm:$0xff]  ;;  %v185_v10 = vld [vmem:[#allocation2 + $0x468] sm:$0xff] }
 0x193   :  { %v1106_v61 = vadd.f32 %v1105_v0, %v945_v50  ;;  %833 = vmatmul.f32.gmra.mxu2 %v172_v26  ;;  %v1108_v11 = vpop.f32.mrf.mxu0  ;;  %v1269_v9 = vpop.f32.mrf.mxu1  ;;  %v471_v26 = vadd.f32 %v1831_v24, %v1912_v47 }
 0x194   :  { %994 = vmatmul.f32.gmra.mxu3 %v173_v33 }
 0x195   :  { %v1267_v32 = vadd.f32 %v1266_v43, %v1106_v61  ;;  %v180_v43 = vld [vmem:[#allocation2 + $0x440] sm:$0xff]  ;;  %v186_v61 = vld [vmem:[#allocation2 + $0x470] sm:$0xff] }
 0x196   :  { %v786_v16 = vpop.f32.mrf.mxu2  ;;  %1155 = vmatmul.f32.gmra.mxu0 %v174_v34  ;;  %1316 = vmatmul.f32.gmra.mxu1 %v175_v37 }
 0x197   :  { %v947_v63 = vpop.f32.mrf.mxu3  ;;  %1403 = vst.msk [vmem:[%s2324_s3 + $0x20] sm:$0xff] %vm1398_vm0, %v1267_v32  ;;  %v787_v21 = vadd.f32 %v786_v16, %v626_v48  ;;  %v190_v32 = vld [vmem:[#allocation2 + $0x490] sm:$0xff]  ;;  %v191_v16 = vld [vmem:[#allocation2 + $0x498] sm:$0xff] }
 0x199   :  { %v948_v15 = vadd.f32 %v947_v63, %v787_v21  ;;  %v474_v63 = vadd.f32 %v1831_v24, %v1919_v60  ;;  %v196_v60 = vld [vmem:[#allocation2 + $0x4c0] sm:$0xff] }
 0x19b   :  { %v1109_v59 = vadd.f32 %v1108_v11, %v948_v15  ;;  %836 = vmatmul.f32.gmra.mxu2 %v178_v39  ;;  %v1111_v22 = vpop.f32.mrf.mxu0  ;;  %v1272_v0 = vpop.f32.mrf.mxu1  ;;  %v187_v11 = vld [vmem:[#allocation2 + $0x478] sm:$0xff]  ;;  %v193_v15 = vld [vmem:[#allocation2 + $0x4a8] sm:$0xff] }
 0x19c   :  { %997 = vmatmul.f32.gmra.mxu3 %v179_v38 }
 0x19d   :  { %v1270_v8 = vadd.f32 %v1269_v9, %v1109_v59  ;;  %v632_v9 = vadd.f32 %v1914_v51, %v471_v26  ;;  %v635_v59 = vadd.f32 %v1921_v62, %v474_v63 }
 0x19e   :  { %v789_v49 = vpop.f32.mrf.mxu2  ;;  %1158 = vmatmul.f32.gmra.mxu0 %v180_v43  ;;  %1319 = vmatmul.f32.gmra.mxu1 %v181_v17  ;;  %v197_v17 = vld [vmem:[#allocation2 + $0x4c8] sm:$0xff] }
 0x19f   :  { %v950_v57 = vpop.f32.mrf.mxu3  ;;  %1404 = vst.msk [vmem:[%s2324_s3 + $0x28] sm:$0xff] %vm1398_vm0, %v1270_v8  ;;  %v790_v35 = vadd.f32 %v789_v49, %v629_v25  ;;  %v2090_v25 = vld [vmem:[#allocation4] ss:$0 sm:$0xff] }
 0x1a0   :  { %v477_v8 = vadd.f32 %v2090_v25, %v1926_v12 }
 0x1a1   :  { %v951_v33 = vadd.f32 %v950_v57, %v790_v35 }
 0x1a2   :  { %v638_v26 = vadd.f32 %v1928_v13, %v477_v8  ;;  %v214_v8 = vld [vmem:[#allocation2 + $0x550] sm:$0xff] }
 0x1a3   :  { %v1112_v20 = vadd.f32 %v1111_v22, %v951_v33  ;;  %839 = vmatmul.f32.gmra.mxu2 %v184_v6  ;;  %v1114_v36 = vpop.f32.mrf.mxu0  ;;  %v1275_v50 = vpop.f32.mrf.mxu1  ;;  %v198_v6 = vld [vmem:[#allocation2 + $0x4d0] sm:$0xff] }
 0x1a4   :  { %1000 = vmatmul.f32.gmra.mxu3 %v185_v10  ;;  %v199_v10 = vld [vmem:[#allocation2 + $0x4d8] sm:$0xff] }
 0x1a5   :  { %v1273_v34 = vadd.f32 %v1272_v0, %v1112_v20 }
 0x1a6   :  { %v792_v37 = vpop.f32.mrf.mxu2  ;;  %1161 = vmatmul.f32.gmra.mxu0 %v186_v61  ;;  %1322 = vmatmul.f32.gmra.mxu1 %v187_v11  ;;  %v203_v61 = vld [vmem:[#allocation2 + $0x4f8] sm:$0xff]  ;;  %v480_v11 = vadd.f32 %v2090_v25, %v1933_v28 }
 0x1a7   :  { %v953_v48 = vpop.f32.mrf.mxu3  ;;  %1405 = vst.msk [vmem:[%s2324_s3 + $0x30] sm:$0xff] %vm1398_vm0, %v1273_v34  ;;  %v793_v47 = vadd.f32 %v792_v37, %v632_v9 }
 0x1a9   :  { %v954_v21 = vadd.f32 %v953_v48, %v793_v47  ;;  %v204_v48 = vld [vmem:[#allocation2 + $0x500] sm:$0xff]  ;;  %v205_v47 = vld [vmem:[#allocation2 + $0x508] sm:$0xff] }
 0x1ab   :  { %v1115_v39 = vadd.f32 %v1114_v36, %v954_v21  ;;  %842 = vmatmul.f32.gmra.mxu2 %v190_v32  ;;  %v1117_v51 = vpop.f32.mrf.mxu0  ;;  %v1278_v38 = vpop.f32.mrf.mxu1  ;;  %v641_v32 = vadd.f32 %v1935_v29, %v480_v11  ;;  %v489_v11 = vadd.f32 %v2090_v25, %v1954_v18 }
 0x1ac   :  { %1003 = vmatmul.f32.gmra.mxu3 %v191_v16 }
 0x1ad   :  { %v1276_v22 = vadd.f32 %v1275_v50, %v1115_v39  ;;  %v202_v50 = vld [vmem:[#allocation2 + $0x4f0] sm:$0xff]  ;;  %v208_v39 = vld [vmem:[#allocation2 + $0x520] sm:$0xff] }
 0x1ae   :  { %v795_v0 = vpop.f32.mrf.mxu2  ;;  %1164 = vmatmul.f32.gmra.mxu0 %v192_v46  ;;  %1325 = vmatmul.f32.gmra.mxu1 %v193_v15 }
 0x1af   :  { %v956_v43 = vpop.f32.mrf.mxu3  ;;  %1406 = vst.msk [vmem:[%s2324_s3 + $0x38] sm:$0xff] %vm1398_vm0, %v1276_v22  ;;  %v796_v24 = vadd.f32 %v795_v0, %v635_v59  ;;  %v210_v22 = vld [vmem:[#allocation2 + $0x530] sm:$0xff]  ;;  %v211_v0 = vld [vmem:[#allocation2 + $0x538] sm:$0xff] }
 0x1b1   :  { %v957_v49 = vadd.f32 %v956_v43, %v796_v24 }
 0x1b3   :  { %v1118_v62 = vadd.f32 %v1117_v51, %v957_v49  ;;  %845 = vmatmul.f32.gmra.mxu2 %v196_v60  ;;  %v1120_v57 = vpop.f32.mrf.mxu0  ;;  %v1281_v35 = vpop.f32.mrf.mxu1  ;;  %v209_v51 = vld [vmem:[#allocation2 + $0x528] sm:$0xff]  ;;  %v215_v49 = vld [vmem:[#allocation2 + $0x558] sm:$0xff] }
 0x1b4   :  { %1006 = vmatmul.f32.gmra.mxu3 %v197_v17 }
 0x1b5   :  { %v1279_v33 = vadd.f32 %v1278_v38, %v1118_v62  ;;  %v483_v38 = vadd.f32 %v2090_v25, %v1940_v44  ;;  %v486_v62 = vadd.f32 %v2090_v25, %v1947_v2 }
 0x1b6   :  { %v798_v20 = vpop.f32.mrf.mxu2  ;;  %1167 = vmatmul.f32.gmra.mxu0 %v198_v6  ;;  %1328 = vmatmul.f32.gmra.mxu1 %v199_v10  ;;  %v216_v10 = vld [vmem:[#allocation2 + $0x560] sm:$0xff] }
 0x1b7   :  { %v959_v36 = vpop.f32.mrf.mxu3  ;;  %1407 = vst.msk [vmem:[%s2324_s3 + $0x40] sm:$0xff] %vm1398_vm0, %v1279_v33  ;;  %v799_v12 = vadd.f32 %v798_v20, %v638_v26  ;;  %v644_v43 = vadd.f32 %v1942_v45, %v483_v38  ;;  %v217_v26 = vld [vmem:[#allocation2 + $0x568] sm:$0xff]  ;;  %v647_v33 = vadd.f32 %v1949_v3, %v486_v62  ;;  %v234_v62 = vld [vmem:[#allocation2 + $0x5f0] sm:$0xff] }
 0x1b9   :  { %v960_v9 = vadd.f32 %v959_v36, %v799_v12 }
 0x1bb   :  { %v1121_v34 = vadd.f32 %v1120_v57, %v960_v9  ;;  %848 = vmatmul.f32.gmra.mxu2 %v202_v50  ;;  %v1123_v13 = vpop.f32.mrf.mxu0  ;;  %v1284_v37 = vpop.f32.mrf.mxu1  ;;  %v220_v50 = vld [vmem:[#allocation2 + $0x580] sm:$0xff] }
 0x1bc   :  { %1009 = vmatmul.f32.gmra.mxu3 %v203_v61  ;;  %v221_v61 = vld [vmem:[#allocation2 + $0x588] sm:$0xff] }
 0x1bd   :  { %v1282_v16 = vadd.f32 %v1281_v35, %v1121_v34 }
 0x1be   :  { %v801_v63 = vpop.f32.mrf.mxu2  ;;  %1170 = vmatmul.f32.gmra.mxu0 %v204_v48  ;;  %1331 = vmatmul.f32.gmra.mxu1 %v205_v47  ;;  %v223_v48 = vld [vmem:[#allocation2 + $0x598] sm:$0xff]  ;;  %v650_v47 = vadd.f32 %v1956_v19, %v489_v11 }
 0x1bf   :  { %v962_v21 = vpop.f32.mrf.mxu3  ;;  %1408 = vst.msk [vmem:[%s2324_s3 + $0x48] sm:$0xff] %vm1398_vm0, %v1282_v16  ;;  %v802_v28 = vadd.f32 %v801_v63, %v641_v32 }
 0x1c1   :  { %v963_v46 = vadd.f32 %v962_v21, %v802_v28  ;;  %v226_v21 = vld [vmem:[#allocation2 + $0x5b0] sm:$0xff]  ;;  %v227_v28 = vld [vmem:[#allocation2 + $0x5b8] sm:$0xff] }
 0x1c3   :  { %v1124_v15 = vadd.f32 %v1123_v13, %v963_v46  ;;  %851 = vmatmul.f32.gmra.mxu2 %v208_v39  ;;  %v1126_v29 = vpop.f32.mrf.mxu0  ;;  %v1287_v59 = vpop.f32.mrf.mxu1  ;;  %v492_v39 = vadd.f32 %v2090_v25, %v1961_v52 }
 0x1c4   :  { %1012 = vmatmul.f32.gmra.mxu3 %v209_v51 }
 0x1c5   :  { %v1285_v24 = vadd.f32 %v1284_v37, %v1124_v15  ;;  %v222_v37 = vld [vmem:[#allocation2 + $0x590] sm:$0xff]  ;;  %v228_v15 = vld [vmem:[#allocation2 + $0x5c0] sm:$0xff] }
 0x1c6   :  { %v804_v60 = vpop.f32.mrf.mxu2  ;;  %1173 = vmatmul.f32.gmra.mxu0 %v210_v22  ;;  %1334 = vmatmul.f32.gmra.mxu1 %v211_v0 }
 0x1c7   :  { %v965_v17 = vpop.f32.mrf.mxu3  ;;  %1409 = vst.msk [vmem:[%s2324_s3 + $0x50] sm:$0xff] %vm1398_vm0, %v1285_v24  ;;  %v805_v44 = vadd.f32 %v804_v60, %v644_v43  ;;  %v232_v24 = vld [vmem:[#allocation2 + $0x5e0] sm:$0xff]  ;;  %v233_v60 = vld [vmem:[#allocation2 + $0x5e8] sm:$0xff] }
 0x1c9   :  { %v966_v57 = vadd.f32 %v965_v17, %v805_v44  ;;  %v495_v17 = vadd.f32 %v2090_v25, %v1968_v7 }
 0x1cb   :  { %v1127_v35 = vadd.f32 %v1126_v29, %v966_v57  ;;  %854 = vmatmul.f32.gmra.mxu2 %v214_v8  ;;  %v1129_v45 = vpop.f32.mrf.mxu0  ;;  %v1290_v6 = vpop.f32.mrf.mxu1  ;;  %v229_v29 = vld [vmem:[#allocation2 + $0x5c8] sm:$0xff]  ;;  %v235_v57 = vld [vmem:[#allocation2 + $0x5f8] sm:$0xff] }
 0x1cc   :  { %1015 = vmatmul.f32.gmra.mxu3 %v215_v49 }
 0x1cd   :  { %v1288_v20 = vadd.f32 %v1287_v59, %v1127_v35  ;;  %v653_v59 = vadd.f32 %v1963_v53, %v492_v39  ;;  %v656_v35 = vadd.f32 %v1970_v14, %v495_v17  ;;  %v256_v17 = vld [vmem:[#allocation2 + $0x6a0] sm:$0xff] }
 0x1ce   :  { %v807_v36 = vpop.f32.mrf.mxu2  ;;  %1176 = vmatmul.f32.gmra.mxu0 %v216_v10  ;;  %1337 = vmatmul.f32.gmra.mxu1 %v217_v26  ;;  %v238_v26 = vld [vmem:[#allocation2 + $0x610] sm:$0xff] }
 0x1cf   :  { %v968_v12 = vpop.f32.mrf.mxu3  ;;  %1410 = vst.msk [vmem:[%s2324_s3 + $0x58] sm:$0xff] %vm1398_vm0, %v1288_v20  ;;  %v808_v2 = vadd.f32 %v807_v36, %v647_v33  ;;  %v239_v33 = vld [vmem:[#allocation2 + $0x618] sm:$0xff]  ;;  %v498_v20 = vadd.f32 %v2090_v25, %v1975_v41 }
 0x1d1   :  { %v969_v9 = vadd.f32 %v968_v12, %v808_v2  ;;  %v659_v11 = vadd.f32 %v1977_v54, %v498_v20  ;;  %v510_v20 = vadd.f32 %v2090_v25, %v2003_v42 }
 0x1d3   :  { %v1130_v34 = vadd.f32 %v1129_v45, %v969_v9  ;;  %857 = vmatmul.f32.gmra.mxu2 %v220_v50  ;;  %v1132_v3 = vpop.f32.mrf.mxu0  ;;  %v1293_v13 = vpop.f32.mrf.mxu1  ;;  %v240_v50 = vld [vmem:[#allocation2 + $0x620] sm:$0xff] }
 0x1d4   :  { %1018 = vmatmul.f32.gmra.mxu3 %v221_v61  ;;  %v241_v61 = vld [vmem:[#allocation2 + $0x628] sm:$0xff] }
 0x1d5   :  { %v1291_v32 = vadd.f32 %v1290_v6, %v1130_v34 }
 0x1d6   :  { %v810_v16 = vpop.f32.mrf.mxu2  ;;  %1179 = vmatmul.f32.gmra.mxu0 %v222_v37  ;;  %1340 = vmatmul.f32.gmra.mxu1 %v223_v48  ;;  %v245_v37 = vld [vmem:[#allocation2 + $0x648] sm:$0xff]  ;;  %v501_v48 = vadd.f32 %v2090_v25, %v1982_v23 }
 0x1d7   :  { %v971_v63 = vpop.f32.mrf.mxu3  ;;  %1411 = vst.msk [vmem:[%s2324_s3 + $0x60] sm:$0xff] %vm1398_vm0, %v1291_v32  ;;  %v811_v18 = vadd.f32 %v810_v16, %v650_v47 }
 0x1d9   :  { %v972_v51 = vadd.f32 %v971_v63, %v811_v18  ;;  %v246_v63 = vld [vmem:[#allocation2 + $0x650] sm:$0xff]  ;;  %v247_v18 = vld [vmem:[#allocation2 + $0x658] sm:$0xff] }
 0x1db   :  { %v1133_v38 = vadd.f32 %v1132_v3, %v972_v51  ;;  %860 = vmatmul.f32.gmra.mxu2 %v226_v21  ;;  %v1135_v19 = vpop.f32.mrf.mxu0  ;;  %v1296_v46 = vpop.f32.mrf.mxu1  ;;  %v662_v21 = vadd.f32 %v1984_v30, %v501_v48 }
 0x1dc   :  { %1021 = vmatmul.f32.gmra.mxu3 %v227_v28 }
 0x1dd   :  { %v1294_v22 = vadd.f32 %v1293_v13, %v1133_v38  ;;  %v244_v13 = vld [vmem:[#allocation2 + $0x640] sm:$0xff]  ;;  %v250_v38 = vld [vmem:[#allocation2 + $0x670] sm:$0xff] }
 0x1de   :  { %v813_v0 = vpop.f32.mrf.mxu2  ;;  %1182 = vmatmul.f32.gmra.mxu0 %v228_v15  ;;  %1343 = vmatmul.f32.gmra.mxu1 %v229_v29 }
 0x1df   :  { %v974_v43 = vpop.f32.mrf.mxu3  ;;  %1412 = vst.msk [vmem:[%s2324_s3 + $0x68] sm:$0xff] %vm1398_vm0, %v1294_v22  ;;  %v814_v52 = vadd.f32 %v813_v0, %v653_v59  ;;  %v252_v22 = vld [vmem:[#allocation2 + $0x680] sm:$0xff]  ;;  %v253_v0 = vld [vmem:[#allocation2 + $0x688] sm:$0xff] }
 0x1e1   :  { %v975_v44 = vadd.f32 %v974_v43, %v814_v52 }
 0x1e3   :  { %v1136_v8 = vadd.f32 %v1135_v19, %v975_v44  ;;  %863 = vmatmul.f32.gmra.mxu2 %v232_v24  ;;  %v1138_v53 = vpop.f32.mrf.mxu0  ;;  %v1299_v49 = vpop.f32.mrf.mxu1  ;;  %v251_v19 = vld [vmem:[#allocation2 + $0x678] sm:$0xff]  ;;  %v257_v44 = vld [vmem:[#allocation2 + $0x6a8] sm:$0xff] }
 0x1e4   :  { %1024 = vmatmul.f32.gmra.mxu3 %v233_v60 }
 0x1e5   :  { %v1297_v45 = vadd.f32 %v1296_v46, %v1136_v8  ;;  %v504_v46 = vadd.f32 %v2090_v25, %v1989_v58  ;;  %v507_v8 = vadd.f32 %v2090_v25, %v1996_v40 }
 0x1e6   :  { %v816_v6 = vpop.f32.mrf.mxu2  ;;  %1185 = vmatmul.f32.gmra.mxu0 %v234_v62  ;;  %1346 = vmatmul.f32.gmra.mxu1 %v235_v57  ;;  %v258_v57 = vld [vmem:[#allocation2 + $0x6b0] sm:$0xff] }
 0x1e7   :  { %v977_v10 = vpop.f32.mrf.mxu3  ;;  %1413 = vst.msk [vmem:[%s2324_s3 + $0x70] sm:$0xff] %vm1398_vm0, %v1297_v45  ;;  %v817_v7 = vadd.f32 %v816_v6, %v656_v35  ;;  %v665_v43 = vadd.f32 %v1991_v4, %v504_v46  ;;  %v259_v35 = vld [vmem:[#allocation2 + $0x6b8] sm:$0xff]  ;;  %v668_v45 = vadd.f32 %v1998_v55, %v507_v8  ;;  %v276_v46 = vld [vmem:[#allocation2 + $0x740] sm:$0xff] }
 0x1e8   :  { %v283_v8 = vld [vmem:[#allocation2 + $0x778] sm:$0xff] }
 0x1e9   :  { %v978_v36 = vadd.f32 %v977_v10, %v817_v7 }
 0x1eb   :  { %v1139_v12 = vadd.f32 %v1138_v53, %v978_v36  ;;  %866 = vmatmul.f32.gmra.mxu2 %v238_v26  ;;  %v1141_v14 = vpop.f32.mrf.mxu0  ;;  %v1302_v2 = vpop.f32.mrf.mxu1  ;;  %v262_v26 = vld [vmem:[#allocation2 + $0x6d0] sm:$0xff] }
 0x1ec   :  { %1027 = vmatmul.f32.gmra.mxu3 %v239_v33  ;;  %v263_v33 = vld [vmem:[#allocation2 + $0x6d8] sm:$0xff] }
 0x1ed   :  { %v1300_v9 = vadd.f32 %v1299_v49, %v1139_v12 }
 0x1ee   :  { %v819_v34 = vpop.f32.mrf.mxu2  ;;  %1188 = vmatmul.f32.gmra.mxu0 %v240_v50  ;;  %1349 = vmatmul.f32.gmra.mxu1 %v241_v61  ;;  %v265_v50 = vld [vmem:[#allocation2 + $0x6e8] sm:$0xff]  ;;  %v671_v61 = vadd.f32 %v2005_v31, %v510_v20 }
 0x1ef   :  { %v980_v3 = vpop.f32.mrf.mxu3  ;;  %1414 = vst.msk [vmem:[%s2324_s3 + $0x78] sm:$0xff] %vm1398_vm0, %v1300_v9  ;;  %v820_v41 = vadd.f32 %v819_v34, %v659_v11 }
 0x1f1   :  { %v981_v47 = vadd.f32 %v980_v3, %v820_v41  ;;  %v268_v3 = vld [vmem:[#allocation2 + $0x700] sm:$0xff]  ;;  %v269_v41 = vld [vmem:[#allocation2 + $0x708] sm:$0xff] }
 0x1f3   :  { %v1142_v32 = vadd.f32 %v1141_v14, %v981_v47  ;;  %869 = vmatmul.f32.gmra.mxu2 %v244_v13  ;;  %v1144_v54 = vpop.f32.mrf.mxu0  ;;  %v1305_v16 = vpop.f32.mrf.mxu1  ;;  %v513_v13 = vadd.f32 %v2090_v25, %v2010_v1 }
 0x1f4   :  { %1030 = vmatmul.f32.gmra.mxu3 %v245_v37 }
 0x1f5   :  { %v1303_v28 = vadd.f32 %v1302_v2, %v1142_v32  ;;  %v264_v2 = vld [vmem:[#allocation2 + $0x6e0] sm:$0xff]  ;;  %v270_v32 = vld [vmem:[#allocation2 + $0x710] sm:$0xff] }
 0x1f6   :  { %v822_v39 = vpop.f32.mrf.mxu2  ;;  %1191 = vmatmul.f32.gmra.mxu0 %v246_v63  ;;  %1352 = vmatmul.f32.gmra.mxu1 %v247_v18 }
 0x1f7   :  { %v983_v51 = vpop.f32.mrf.mxu3  ;;  %1415 = vst.msk [vmem:[%s2324_s3 + $0x80] sm:$0xff] %vm1398_vm0, %v1303_v28  ;;  %v823_v23 = vadd.f32 %v822_v39, %v662_v21  ;;  %v274_v28 = vld [vmem:[#allocation2 + $0x730] sm:$0xff]  ;;  %v275_v39 = vld [vmem:[#allocation2 + $0x738] sm:$0xff] }
 0x1f9   :  { %v984_v15 = vadd.f32 %v983_v51, %v823_v23  ;;  %v516_v51 = vadd.f32 %v2090_v25, %v2017_v27 }
 0x1fb   :  { %v1145_v29 = vadd.f32 %v1144_v54, %v984_v15  ;;  %872 = vmatmul.f32.gmra.mxu2 %v250_v38  ;;  %v1147_v30 = vpop.f32.mrf.mxu0  ;;  %v1308_v59 = vpop.f32.mrf.mxu1  ;;  %v271_v54 = vld [vmem:[#allocation2 + $0x718] sm:$0xff]  ;;  %v277_v15 = vld [vmem:[#allocation2 + $0x748] sm:$0xff] }
 0x1fc   :  { %1033 = vmatmul.f32.gmra.mxu3 %v251_v19 }
 0x1fd   :  { %v1306_v52 = vadd.f32 %v1305_v16, %v1145_v29  ;;  %v674_v16 = vadd.f32 %v2012_v5, %v513_v13  ;;  %v677_v29 = vadd.f32 %v2019_v56, %v516_v51 }
 0x1fe   :  { %v825_v24 = vpop.f32.mrf.mxu2  ;;  %1194 = vmatmul.f32.gmra.mxu0 %v252_v22  ;;  %1355 = vmatmul.f32.gmra.mxu1 %v253_v0  ;;  %v280_v0 = vld [vmem:[#allocation2 + $0x760] sm:$0xff] }
 0x1ff   :  { %v986_v60 = vpop.f32.mrf.mxu3  ;;  %1416 = vst.msk [vmem:[%s2324_s3 + $0x88] sm:$0xff] %vm1398_vm0, %v1306_v52  ;;  %v826_v58 = vadd.f32 %v825_v24, %v665_v43  ;;  %v281_v43 = vld [vmem:[#allocation2 + $0x768] sm:$0xff]  ;;  %v2351_v52 = vld [vmem:[#allocation31_spill] sm:$0xff] }
 0x200   :  { %v519_v24 = vadd.f32 %v2090_v25, %v2351_v52  ;;  %v2356_v52 = vld [vmem:[#allocation11_spill] sm:$0xff] }
 0x201   :  { %v987_v53 = vadd.f32 %v986_v60, %v826_v58 }
 0x203   :  { %v1148_v49 = vadd.f32 %v1147_v30, %v987_v53  ;;  %875 = vmatmul.f32.gmra.mxu2 %v256_v17  ;;  %v1150_v4 = vpop.f32.mrf.mxu0  ;;  %v1311_v62 = vpop.f32.mrf.mxu1  ;;  %v2352_v53 = vld [vmem:[#allocation32_spill] sm:$0xff] }
 0x204   :  { %1036 = vmatmul.f32.gmra.mxu3 %v257_v44  ;;  %v282_v44 = vld [vmem:[#allocation2 + $0x770] sm:$0xff] }
 0x205   :  { %v1309_v6 = vadd.f32 %v1308_v59, %v1148_v49  ;;  %v680_v49 = vadd.f32 %v2352_v53, %v519_v24  ;;  %v312_v53 = vld [vmem:[#allocation2 + $0x860] sm:$0xff] }
 0x206   :  { %v828_v10 = vpop.f32.mrf.mxu2  ;;  %1197 = vmatmul.f32.gmra.mxu0 %v258_v57  ;;  %1358 = vmatmul.f32.gmra.mxu1 %v259_v35  ;;  %v286_v35 = vld [vmem:[#allocation2 + $0x790] sm:$0xff] }
 0x207   :  { %v989_v7 = vpop.f32.mrf.mxu3  ;;  %1417 = vst.msk [vmem:[%s2324_s3 + $0x90] sm:$0xff] %vm1398_vm0, %v1309_v6  ;;  %v829_v40 = vadd.f32 %v828_v10, %v668_v45  ;;  %v287_v45 = vld [vmem:[#allocation2 + $0x798] sm:$0xff] }
 0x209   :  { %v990_v36 = vadd.f32 %v989_v7, %v829_v40 }
 0x20b   :  { %v1151_v12 = vadd.f32 %v1150_v4, %v990_v36  ;;  %878 = vmatmul.f32.gmra.mxu2 %v262_v26  ;;  %v1153_v55 = vpop.f32.mrf.mxu0  ;;  %v1314_v14 = vpop.f32.mrf.mxu1  ;;  %v288_v26 = vld [vmem:[#allocation2 + $0x7a0] sm:$0xff] }
 0x20c   :  { %1039 = vmatmul.f32.gmra.mxu3 %v263_v33  ;;  %v289_v33 = vld [vmem:[#allocation2 + $0x7a8] sm:$0xff] }
 0x20d   :  { %v1312_v11 = vadd.f32 %v1311_v62, %v1151_v12 }
 0x20e   :  { %v831_v9 = vpop.f32.mrf.mxu2  ;;  %1200 = vmatmul.f32.gmra.mxu0 %v264_v2  ;;  %1361 = vmatmul.f32.gmra.mxu1 %v265_v50  ;;  %v292_v2 = vld [vmem:[#allocation2 + $0x7c0] sm:$0xff]  ;;  %v293_v50 = vld [vmem:[#allocation2 + $0x7c8] sm:$0xff] }
 0x20f   :  { %v992_v34 = vpop.f32.mrf.mxu3  ;;  %1418 = vst.msk [vmem:[%s2324_s3 + $0x98] sm:$0xff] %vm1398_vm0, %v1312_v11  ;;  %v832_v42 = vadd.f32 %v831_v9, %v671_v61 }
 0x211   :  { %v993_v37 = vadd.f32 %v992_v34, %v832_v42  ;;  %v294_v42 = vld [vmem:[#allocation2 + $0x7d0] sm:$0xff] }
 0x213   :  { %v1154_v48 = vadd.f32 %v1153_v55, %v993_v37  ;;  %881 = vmatmul.f32.gmra.mxu2 %v268_v3  ;;  %v1156_v31 = vpop.f32.mrf.mxu0  ;;  %v1317_v47 = vpop.f32.mrf.mxu1  ;;  %v2353_v55 = vld [vmem:[#allocation8_spill] sm:$0xff]  ;;  %v295_v3 = vld [vmem:[#allocation2 + $0x7d8] sm:$0xff] }
 0x214   :  { %1042 = vmatmul.f32.gmra.mxu3 %v269_v41 }
 0x215   :  { %v1315_v63 = vadd.f32 %v1314_v14, %v1154_v48  ;;  %v2354_v48 = vld [vmem:[#allocation9_spill] sm:$0xff] }
 0x216   :  { %v834_v18 = vpop.f32.mrf.mxu2  ;;  %1203 = vmatmul.f32.gmra.mxu0 %v270_v32  ;;  %1364 = vmatmul.f32.gmra.mxu1 %v271_v54  ;;  %v299_v32 = vld [vmem:[#allocation2 + $0x7f8] sm:$0xff] }
 0x217   :  { %v995_v21 = vpop.f32.mrf.mxu3  ;;  %1419 = vst.msk [vmem:[%s2324_s3 + $0xa0] sm:$0xff] %vm1398_vm0, %v1315_v63  ;;  %v835_v1 = vadd.f32 %v834_v18, %v674_v16 }
 0x219   :  { %v996_v23 = vadd.f32 %v995_v21, %v835_v1  ;;  %v300_v21 = vld [vmem:[#allocation2 + $0x800] sm:$0xff]  ;;  %v301_v1 = vld [vmem:[#allocation2 + $0x808] sm:$0xff] }
 0x21b   :  { %v1157_v38 = vadd.f32 %v1156_v31, %v996_v23  ;;  %884 = vmatmul.f32.gmra.mxu2 %v274_v28  ;;  %v1159_v5 = vpop.f32.mrf.mxu0  ;;  %v1320_v19 = vpop.f32.mrf.mxu1  ;;  %v2355_v23 = vld [vmem:[#allocation10_spill] sm:$0xff] }
 0x21c   :  { %1045 = vmatmul.f32.gmra.mxu3 %v275_v39 }
 0x21d   :  { %v1318_v30 = vadd.f32 %v1317_v47, %v1157_v38  ;;  %v298_v47 = vld [vmem:[#allocation2 + $0x7f0] sm:$0xff] }
 0x21e   :  { %v837_v59 = vpop.f32.mrf.mxu2  ;;  %1206 = vmatmul.f32.gmra.mxu0 %v276_v46  ;;  %1367 = vmatmul.f32.gmra.mxu1 %v277_v15 }
 0x21f   :  { %v998_v22 = vpop.f32.mrf.mxu3  ;;  %1420 = vst.msk [vmem:[%s2324_s3 + $0xa8] sm:$0xff] %vm1398_vm0, %v1318_v30  ;;  %v838_v27 = vadd.f32 %v837_v59, %v677_v29  ;;  %v306_v59 = vld [vmem:[#allocation2 + $0x830] sm:$0xff] }
 0x221   :  { %v999_v60 = vadd.f32 %v998_v22, %v838_v27  ;;  %v307_v22 = vld [vmem:[#allocation2 + $0x838] sm:$0xff] }
 0x223   :  { %v1160_v58 = vadd.f32 %v1159_v5, %v999_v60  ;;  %887 = vmatmul.f32.gmra.mxu2 %v280_v0  ;;  %v1162_v56 = vpop.f32.mrf.mxu0  ;;  %v1323_v17 = vpop.f32.mrf.mxu1  ;;  %v304_v5 = vld [vmem:[#allocation2 + $0x820] sm:$0xff]  ;;  %v310_v60 = vld [vmem:[#allocation2 + $0x850] sm:$0xff] }
 0x224   :  { %1048 = vmatmul.f32.gmra.mxu3 %v281_v43 }
 0x225   :  { %v1321_v4 = vadd.f32 %v1320_v19, %v1160_v58  ;;  %v305_v19 = vld [vmem:[#allocation2 + $0x828] sm:$0xff]  ;;  %v311_v58 = vld [vmem:[#allocation2 + $0x858] sm:$0xff] }
 0x226   :  { %v840_v62 = vpop.f32.mrf.mxu2  ;;  %1209 = vmatmul.f32.gmra.mxu0 %v282_v44  ;;  %1370 = vmatmul.f32.gmra.mxu1 %v283_v8 }
 0x227   :  { %v1001_v57 = vpop.f32.mrf.mxu3  ;;  %1421 = vst.msk [vmem:[%s2324_s3 + $0xb0] sm:$0xff] %vm1398_vm0, %v1321_v4  ;;  %v841_v25 = vadd.f32 %v840_v62, %v680_v49  ;;  %v313_v49 = vld [vmem:[#allocation2 + $0x868] sm:$0xff] }
 0x229   :  { %v1002_v6 = vadd.f32 %v1001_v57, %v841_v25  ;;  %v2357_v25 = vld [vmem:[#allocation12_spill] sm:$0xff] }
 0x22b   :  { %v1163_v10 = vadd.f32 %v1162_v56, %v1002_v6  ;;  %890 = vmatmul.f32.gmra.mxu2 %v286_v35  ;;  %v1165_v7 = vpop.f32.mrf.mxu0  ;;  %v1326_v40 = vpop.f32.mrf.mxu1  ;;  %v317_v6 = vld [vmem:[#allocation2 + $0x888] sm:$0xff] }
 0x22c   :  { %1051 = vmatmul.f32.gmra.mxu3 %v287_v45  ;;  %v316_v45 = vld [vmem:[#allocation2 + $0x880] sm:$0xff] }
 0x22d   :  { %v1324_v20 = vadd.f32 %v1323_v17, %v1163_v10 }
 0x22e   :  { %v843_v36 = vpop.f32.mrf.mxu2  ;;  %1212 = vmatmul.f32.gmra.mxu0 %v288_v26  ;;  %1373 = vmatmul.f32.gmra.mxu1 %v289_v33  ;;  %v318_v33 = vld [vmem:[#allocation2 + $0x890] sm:$0xff] }
 0x22f   :  { %v1004_v12 = vpop.f32.mrf.mxu3  ;;  %1422 = vst.msk [vmem:[%s2324_s3 + $0xb8] sm:$0xff] %vm1398_vm0, %v1324_v20  ;;  %v844_v14 = vadd.f32 %v843_v36, %v2353_v55  ;;  %v319_v20 = vld [vmem:[#allocation2 + $0x898] sm:$0xff] }
 0x231   :  { %v1005_v61 = vadd.f32 %v1004_v12, %v844_v14  ;;  %v2358_v14 = vld [vmem:[#allocation13_spill] sm:$0xff] }
 0x233   :  { %v1166_v11 = vadd.f32 %v1165_v7, %v1005_v61  ;;  %893 = vmatmul.f32.gmra.mxu2 %v292_v2  ;;  %v1168_v9 = vpop.f32.mrf.mxu0  ;;  %v1329_v34 = vpop.f32.mrf.mxu1  ;;  %v323_v61 = vld [vmem:[#allocation2 + $0x8b8] sm:$0xff] }
 0x234   :  { %1054 = vmatmul.f32.gmra.mxu3 %v293_v50  ;;  %v322_v50 = vld [vmem:[#allocation2 + $0x8b0] sm:$0xff] }
 0x235   :  { %v1327_v41 = vadd.f32 %v1326_v40, %v1166_v11 }
 0x236   :  { %v846_v13 = vpop.f32.mrf.mxu2  ;;  %1215 = vmatmul.f32.gmra.mxu0 %v294_v42  ;;  %1376 = vmatmul.f32.gmra.mxu1 %v295_v3  ;;  %v324_v3 = vld [vmem:[#allocation2 + $0x8c0] sm:$0xff] }
 0x237   :  { %v1007_v37 = vpop.f32.mrf.mxu3  ;;  %1423 = vst.msk [vmem:[%s2324_s3 + $0xc0] sm:$0xff] %vm1398_vm0, %v1327_v41  ;;  %v847_v31 = vadd.f32 %v846_v13, %v2354_v48  ;;  %v325_v41 = vld [vmem:[#allocation2 + $0x8c8] sm:$0xff] }
 0x239   :  { %v1008_v54 = vadd.f32 %v1007_v37, %v847_v31  ;;  %v2359_v31 = vld [vmem:[#allocation14_spill] sm:$0xff] }
 0x23b   :  { %v1169_v16 = vadd.f32 %v1168_v9, %v1008_v54  ;;  %896 = vmatmul.f32.gmra.mxu2 %v298_v47  ;;  %v1171_v63 = vpop.f32.mrf.mxu0  ;;  %v1332_v18 = vpop.f32.mrf.mxu1  ;;  %v329_v54 = vld [vmem:[#allocation2 + $0x8e8] sm:$0xff] }
 0x23c   :  { %1057 = vmatmul.f32.gmra.mxu3 %v299_v32  ;;  %v328_v32 = vld [vmem:[#allocation2 + $0x8e0] sm:$0xff] }
 0x23d   :  { %v1330_v28 = vadd.f32 %v1329_v34, %v1169_v16 }
 0x23e   :  { %v849_v39 = vpop.f32.mrf.mxu2  ;;  %1218 = vmatmul.f32.gmra.mxu0 %v300_v21  ;;  %1379 = vmatmul.f32.gmra.mxu1 %v301_v1  ;;  %v330_v1 = vld [vmem:[#allocation2 + $0x8f0] sm:$0xff] }
 0x23f   :  { %v1010_v51 = vpop.f32.mrf.mxu3  ;;  %1424 = vst.msk [vmem:[%s2324_s3 + $0xc8] sm:$0xff] %vm1398_vm0, %v1330_v28  ;;  %v850_v38 = vadd.f32 %v849_v39, %v2355_v23  ;;  %v331_v28 = vld [vmem:[#allocation2 + $0x8f8] sm:$0xff] }
 0x241   :  { %v1011_v46 = vadd.f32 %v1010_v51, %v850_v38  ;;  %v2360_v38 = vld [vmem:[#allocation15_spill] sm:$0xff] }
 0x243   :  { %v1172_v15 = vadd.f32 %v1171_v63, %v1011_v46  ;;  %899 = vmatmul.f32.gmra.mxu2 %v304_v5  ;;  %v1174_v29 = vpop.f32.mrf.mxu0  ;;  %v1335_v30 = vpop.f32.mrf.mxu1 }
 0x244   :  { %1060 = vmatmul.f32.gmra.mxu3 %v305_v19 }
 0x245   :  { %v1333_v27 = vadd.f32 %v1332_v18, %v1172_v15 }
 0x246   :  { %v852_v0 = vpop.f32.mrf.mxu2  ;;  %1221 = vmatmul.f32.gmra.mxu0 %v306_v59  ;;  %1382 = vmatmul.f32.gmra.mxu1 %v307_v22 }
 0x247   :  { %v1013_v43 = vpop.f32.mrf.mxu3  ;;  %1425 = vst.msk [vmem:[%s2324_s3 + $0xd0] sm:$0xff] %vm1398_vm0, %v1333_v27  ;;  %v853_v24 = vadd.f32 %v852_v0, %v2356_v52  ;;  %v2361_v27 = vld [vmem:[#allocation16_spill] sm:$0xff] }
 0x249   :  { %v1014_v56 = vadd.f32 %v1013_v43, %v853_v24 }
 0x24b   :  { %v1175_v17 = vadd.f32 %v1174_v29, %v1014_v56  ;;  %902 = vmatmul.f32.gmra.mxu2 %v310_v60  ;;  %v1177_v44 = vpop.f32.mrf.mxu0  ;;  %v1338_v8 = vpop.f32.mrf.mxu1 }
 0x24c   :  { %1063 = vmatmul.f32.gmra.mxu3 %v311_v58 }
 0x24d   :  { %v1336_v4 = vadd.f32 %v1335_v30, %v1175_v17 }
 0x24e   :  { %v855_v62 = vpop.f32.mrf.mxu2  ;;  %1224 = vmatmul.f32.gmra.mxu0 %v312_v53  ;;  %1385 = vmatmul.f32.gmra.mxu1 %v313_v49 }
 0x24f   :  { %v1016_v57 = vpop.f32.mrf.mxu3  ;;  %1426 = vst.msk [vmem:[%s2324_s3 + $0xd8] sm:$0xff] %vm1398_vm0, %v1336_v4  ;;  %v856_v35 = vadd.f32 %v855_v62, %v2357_v25 }
 0x251   :  { %v1017_v10 = vadd.f32 %v1016_v57, %v856_v35 }
 0x253   :  { %v1178_v7 = vadd.f32 %v1177_v44, %v1017_v10  ;;  %905 = vmatmul.f32.gmra.mxu2 %v316_v45  ;;  %v1180_v40 = vpop.f32.mrf.mxu0  ;;  %v1341_v26 = vpop.f32.mrf.mxu1  ;;  %v2362_v44 = vld [vmem:[#allocation17_spill] sm:$0xff]  ;;  %v2363_v45 = vld [vmem:[#allocation18_spill] sm:$0xff] }
 0x254   :  { %1066 = vmatmul.f32.gmra.mxu3 %v317_v6 }
 0x255   :  { %v1339_v36 = vadd.f32 %v1338_v8, %v1178_v7 }
 0x256   :  { %v858_v12 = vpop.f32.mrf.mxu2  ;;  %1227 = vmatmul.f32.gmra.mxu0 %v318_v33  ;;  %1388 = vmatmul.f32.gmra.mxu1 %v319_v20 }
 0x257   :  { %v1019_v55 = vpop.f32.mrf.mxu3  ;;  %1427 = vst.msk [vmem:[%s2324_s3 + $0xe0] sm:$0xff] %vm1398_vm0, %v1339_v36  ;;  %v859_v2 = vadd.f32 %v858_v12, %v2358_v14  ;;  %v2364_v12 = vld [vmem:[#allocation19_spill] sm:$0xff] }
 0x259   :  { %v1020_v11 = vadd.f32 %v1019_v55, %v859_v2 }
 0x25b   :  { %v1181_v9 = vadd.f32 %v1180_v40, %v1020_v11  ;;  %908 = vmatmul.f32.gmra.mxu2 %v322_v50  ;;  %v1183_v34 = vpop.f32.mrf.mxu0  ;;  %v1344_v42 = vpop.f32.mrf.mxu1 }
 0x25c   :  { %1069 = vmatmul.f32.gmra.mxu3 %v323_v61 }
 0x25d   :  { %v1342_v13 = vadd.f32 %v1341_v26, %v1181_v9 }
 0x25e   :  { %v861_v37 = vpop.f32.mrf.mxu2  ;;  %1230 = vmatmul.f32.gmra.mxu0 %v324_v3  ;;  %1391 = vmatmul.f32.gmra.mxu1 %v325_v41 }
 0x25f   :  { %v1022_v48 = vpop.f32.mrf.mxu3  ;;  %1428 = vst.msk [vmem:[%s2324_s3 + $0xe8] sm:$0xff] %vm1398_vm0, %v1342_v13  ;;  %v862_v47 = vadd.f32 %v861_v37, %v2359_v31 }
 0x261   :  { %v1023_v16 = vadd.f32 %v1022_v48, %v862_v47 }
 0x263   :  { %v1184_v63 = vadd.f32 %v1183_v34, %v1023_v16  ;;  %911 = vmatmul.f32.gmra.mxu2 %v328_v32  ;;  %v1186_v18 = vpop.f32.mrf.mxu0  ;;  %v1347_v21 = vpop.f32.mrf.mxu1 }
 0x264   :  { %1072 = vmatmul.f32.gmra.mxu3 %v329_v54  ;;  %v2366_v54 = vld [vmem:[#allocation21_spill] sm:$0xff] }
 0x265   :  { %v1345_v39 = vadd.f32 %v1344_v42, %v1184_v63  ;;  %v2365_v42 = vld [vmem:[#allocation20_spill] sm:$0xff] }
 0x266   :  { %v864_v51 = vpop.f32.mrf.mxu2  ;;  %1233 = vmatmul.f32.gmra.mxu0 %v330_v1  ;;  %1394 = vmatmul.f32.gmra.mxu1 %v331_v28 }
 0x267   :  { %v1025_v23 = vpop.f32.mrf.mxu3  ;;  %1429 = vst.msk [vmem:[%s2324_s3 + $0xf0] sm:$0xff] %vm1398_vm0, %v1345_v39  ;;  %v865_v5 = vadd.f32 %v864_v51, %v2360_v38 }
 0x269   :  { %v1026_v19 = vadd.f32 %v1025_v23, %v865_v5  ;;  %v2367_v23 = vld [vmem:[#allocation22_spill] sm:$0xff] }
 0x26b   :  { %v1187_v46 = vadd.f32 %v1186_v18, %v1026_v19  ;;  %v1189_v15 = vpop.f32.mrf.mxu0  ;;  %v1350_v29 = vpop.f32.mrf.mxu1 }
 0x26d   :  { %v1348_v30 = vadd.f32 %v1347_v21, %v1187_v46 }
 0x26e   :  { %v867_v59 = vpop.f32.mrf.mxu2 }
 0x26f   :  { %v1028_v22 = vpop.f32.mrf.mxu3  ;;  %1430 = vst.msk [vmem:[%s2324_s3 + $0xf8] sm:$0xff] %vm1398_vm0, %v1348_v30  ;;  %v868_v0 = vadd.f32 %v867_v59, %v2361_v27 }
 0x271   :  { %v1029_v43 = vadd.f32 %v1028_v22, %v868_v0  ;;  %v2368_v22 = vld [vmem:[#allocation23_spill] sm:$0xff] }
 0x273   :  { %v1190_v52 = vadd.f32 %v1189_v15, %v1029_v43  ;;  %v1192_v24 = vpop.f32.mrf.mxu0  ;;  %v1353_v60 = vpop.f32.mrf.mxu1 }
 0x275   :  { %v1351_v58 = vadd.f32 %v1350_v29, %v1190_v52 }
 0x276   :  { %v870_v56 = vpop.f32.mrf.mxu2 }
 0x277   :  { %v1031_v17 = vpop.f32.mrf.mxu3  ;;  %1431 = vst.msk [vmem:[%s2324_s3 + $0x100] sm:$0xff] %vm1398_vm0, %v1351_v58  ;;  %v871_v8 = vadd.f32 %v870_v56, %v2362_v44 }
 0x279   :  { %v1032_v53 = vadd.f32 %v1031_v17, %v871_v8  ;;  %v2369_v17 = vld [vmem:[#allocation24_spill] sm:$0xff] }
 0x27b   :  { %v1193_v49 = vadd.f32 %v1192_v24, %v1032_v53  ;;  %v1195_v4 = vpop.f32.mrf.mxu0  ;;  %v1356_v62 = vpop.f32.mrf.mxu1 }
 0x27d   :  { %v1354_v57 = vadd.f32 %v1353_v60, %v1193_v49 }
 0x27e   :  { %v873_v25 = vpop.f32.mrf.mxu2 }
 0x27f   :  { %v1034_v35 = vpop.f32.mrf.mxu3  ;;  %1432 = vst.msk [vmem:[%s2324_s3 + $0x108] sm:$0xff] %vm1398_vm0, %v1354_v57  ;;  %v874_v6 = vadd.f32 %v873_v25, %v2363_v45 }
 0x281   :  { %v1035_v10 = vadd.f32 %v1034_v35, %v874_v6  ;;  %v2370_v35 = vld [vmem:[#allocation25_spill] sm:$0xff] }
 0x283   :  { %v1196_v7 = vadd.f32 %v1195_v4, %v1035_v10  ;;  %v1198_v40 = vpop.f32.mrf.mxu0  ;;  %v1359_v26 = vpop.f32.mrf.mxu1 }
 0x285   :  { %v1357_v33 = vadd.f32 %v1356_v62, %v1196_v7 }
 0x286   :  { %v876_v20 = vpop.f32.mrf.mxu2 }
 0x287   :  { %v1037_v36 = vpop.f32.mrf.mxu3  ;;  %1433 = vst.msk [vmem:[%s2324_s3 + $0x110] sm:$0xff] %vm1398_vm0, %v1357_v33  ;;  %v877_v55 = vadd.f32 %v876_v20, %v2364_v12 }
 0x289   :  { %v1038_v14 = vadd.f32 %v1037_v36, %v877_v55  ;;  %v2371_v36 = vld [vmem:[#allocation26_spill] sm:$0xff] }
 0x28b   :  { %v1199_v2 = vadd.f32 %v1198_v40, %v1038_v14  ;;  %v1201_v50 = vpop.f32.mrf.mxu0  ;;  %v1362_v61 = vpop.f32.mrf.mxu1 }
 0x28d   :  { %v1360_v11 = vadd.f32 %v1359_v26, %v1199_v2 }
 0x28e   :  { %v879_v9 = vpop.f32.mrf.mxu2 }
 0x28f   :  { %v1040_v34 = vpop.f32.mrf.mxu3  ;;  %1434 = vst.msk [vmem:[%s2324_s3 + $0x118] sm:$0xff] %vm1398_vm0, %v1360_v11  ;;  %v880_v3 = vadd.f32 %v879_v9, %v2365_v42 }
 0x291   :  { %v1041_v41 = vadd.f32 %v1040_v34, %v880_v3  ;;  %v2372_v34 = vld [vmem:[#allocation27_spill] sm:$0xff] }
 0x293   :  { %v1202_v13 = vadd.f32 %v1201_v50, %v1041_v41  ;;  %v1204_v37 = vpop.f32.mrf.mxu0  ;;  %v1365_v48 = vpop.f32.mrf.mxu1 }
 0x295   :  { %v1363_v31 = vadd.f32 %v1362_v61, %v1202_v13 }
 0x296   :  { %v882_v47 = vpop.f32.mrf.mxu2 }
 0x297   :  { %v1043_v32 = vpop.f32.mrf.mxu3  ;;  %1435 = vst.msk [vmem:[%s2324_s3 + $0x120] sm:$0xff] %vm1398_vm0, %v1363_v31  ;;  %v883_v16 = vadd.f32 %v882_v47, %v2366_v54 }
 0x299   :  { %v1044_v63 = vadd.f32 %v1043_v32, %v883_v16  ;;  %v2373_v32 = vld [vmem:[#allocation28_spill] sm:$0xff] }
 0x29b   :  { %v1205_v18 = vadd.f32 %v1204_v37, %v1044_v63  ;;  %v1207_v21 = vpop.f32.mrf.mxu0  ;;  %v1368_v1 = vpop.f32.mrf.mxu1 }
 0x29d   :  { %v1366_v28 = vadd.f32 %v1365_v48, %v1205_v18 }
 0x29e   :  { %v885_v39 = vpop.f32.mrf.mxu2 }
 0x29f   :  { %v1046_v51 = vpop.f32.mrf.mxu3  ;;  %1436 = vst.msk [vmem:[%s2324_s3 + $0x128] sm:$0xff] %vm1398_vm0, %v1366_v28  ;;  %v886_v38 = vadd.f32 %v885_v39, %v2367_v23 }
 0x2a1   :  { %v1047_v5 = vadd.f32 %v1046_v51, %v886_v38  ;;  %v2374_v51 = vld [vmem:[#allocation29_spill] sm:$0xff] }
 0x2a3   :  { %v1208_v19 = vadd.f32 %v1207_v21, %v1047_v5  ;;  %v1210_v46 = vpop.f32.mrf.mxu0  ;;  %v1371_v15 = vpop.f32.mrf.mxu1 }
 0x2a5   :  { %v1369_v29 = vadd.f32 %v1368_v1, %v1208_v19 }
 0x2a6   :  { %v888_v30 = vpop.f32.mrf.mxu2 }
 0x2a7   :  { %v1049_v59 = vpop.f32.mrf.mxu3  ;;  %1437 = vst.msk [vmem:[%s2324_s3 + $0x130] sm:$0xff] %vm1398_vm0, %v1369_v29  ;;  %v889_v27 = vadd.f32 %v888_v30, %v2368_v22  ;;  %v2375_v30 = vld [vmem:[#allocation30_spill] sm:$0xff] }
 0x2a9   :  { %v1050_v0 = vadd.f32 %v1049_v59, %v889_v27 }
 0x2ab   :  { %v1211_v43 = vadd.f32 %v1210_v46, %v1050_v0  ;;  %v1213_v52 = vpop.f32.mrf.mxu0  ;;  %v1374_v24 = vpop.f32.mrf.mxu1 }
 0x2ad   :  { %v1372_v60 = vadd.f32 %v1371_v15, %v1211_v43 }
 0x2ae   :  { %v891_v58 = vpop.f32.mrf.mxu2 }
 0x2af   :  { %v1052_v56 = vpop.f32.mrf.mxu3  ;;  %1438 = vst.msk [vmem:[%s2324_s3 + $0x138] sm:$0xff] %vm1398_vm0, %v1372_v60  ;;  %v892_v44 = vadd.f32 %v891_v58, %v2369_v17  ;;  %v2376_v60 = vld [vmem:[#allocation33_spill] sm:$0xff] }
 0x2b1   :  { %v1053_v8 = vadd.f32 %v1052_v56, %v892_v44 }
 0x2b3   :  { %v1214_v53 = vadd.f32 %v1213_v52, %v1053_v8  ;;  %v1216_v49 = vpop.f32.mrf.mxu0  ;;  %v1377_v4 = vpop.f32.mrf.mxu1 }
 0x2b5   :  { %v1375_v62 = vadd.f32 %v1374_v24, %v1214_v53 }
 0x2b6   :  { %v894_v57 = vpop.f32.mrf.mxu2 }
 0x2b7   :  { %v1055_v25 = vpop.f32.mrf.mxu3  ;;  %1439 = vst.msk [vmem:[%s2324_s3 + $0x140] sm:$0xff] %vm1398_vm0, %v1375_v62  ;;  %v895_v45 = vadd.f32 %v894_v57, %v2370_v35 }
 0x2b9   :  { %v1056_v6 = vadd.f32 %v1055_v25, %v895_v45 }
 0x2bb   :  { %v1217_v10 = vadd.f32 %v1216_v49, %v1056_v6  ;;  %v1219_v7 = vpop.f32.mrf.mxu0  ;;  %v1380_v40 = vpop.f32.mrf.mxu1 }
 0x2bd   :  { %v1378_v26 = vadd.f32 %v1377_v4, %v1217_v10 }
 0x2be   :  { %v897_v33 = vpop.f32.mrf.mxu2 }
 0x2bf   :  { %v1058_v20 = vpop.f32.mrf.mxu3  ;;  %1440 = vst.msk [vmem:[%s2324_s3 + $0x148] sm:$0xff] %vm1398_vm0, %v1378_v26  ;;  %v898_v12 = vadd.f32 %v897_v33, %v2371_v36 }
 0x2c1   :  { %v1059_v55 = vadd.f32 %v1058_v20, %v898_v12 }
 0x2c3   :  { %v1220_v14 = vadd.f32 %v1219_v7, %v1059_v55  ;;  %v1222_v2 = vpop.f32.mrf.mxu0  ;;  %v1383_v50 = vpop.f32.mrf.mxu1 }
 0x2c5   :  { %v1381_v61 = vadd.f32 %v1380_v40, %v1220_v14 }
 0x2c6   :  { %v900_v11 = vpop.f32.mrf.mxu2 }
 0x2c7   :  { %v1061_v9 = vpop.f32.mrf.mxu3  ;;  %1441 = vst.msk [vmem:[%s2324_s3 + $0x150] sm:$0xff] %vm1398_vm0, %v1381_v61  ;;  %v901_v42 = vadd.f32 %v900_v11, %v2372_v34 }
 0x2c9   :  { %v1062_v3 = vadd.f32 %v1061_v9, %v901_v42 }
 0x2cb   :  { %v1223_v41 = vadd.f32 %v1222_v2, %v1062_v3  ;;  %v1225_v13 = vpop.f32.mrf.mxu0  ;;  %v1386_v37 = vpop.f32.mrf.mxu1 }
 0x2cd   :  { %v1384_v48 = vadd.f32 %v1383_v50, %v1223_v41 }
 0x2ce   :  { %v903_v31 = vpop.f32.mrf.mxu2 }
 0x2cf   :  { %v1064_v47 = vpop.f32.mrf.mxu3  ;;  %1442 = vst.msk [vmem:[%s2324_s3 + $0x158] sm:$0xff] %vm1398_vm0, %v1384_v48  ;;  %v904_v54 = vadd.f32 %v903_v31, %v2373_v32 }
 0x2d1   :  { %v1065_v16 = vadd.f32 %v1064_v47, %v904_v54 }
 0x2d3   :  { %v1226_v63 = vadd.f32 %v1225_v13, %v1065_v16  ;;  %v1228_v18 = vpop.f32.mrf.mxu0  ;;  %v1389_v1 = vpop.f32.mrf.mxu1 }
 0x2d5   :  { %v1387_v21 = vadd.f32 %v1386_v37, %v1226_v63 }
 0x2d6   :  { %v906_v28 = vpop.f32.mrf.mxu2 }
 0x2d7   :  { %v1067_v39 = vpop.f32.mrf.mxu3  ;;  %1443 = vst.msk [vmem:[%s2324_s3 + $0x160] sm:$0xff] %vm1398_vm0, %v1387_v21  ;;  %v907_v23 = vadd.f32 %v906_v28, %v2374_v51 }
 0x2d9   :  { %v1068_v38 = vadd.f32 %v1067_v39, %v907_v23 }
 0x2db   :  { %v1229_v5 = vadd.f32 %v1228_v18, %v1068_v38  ;;  %v1231_v46 = vpop.f32.mrf.mxu0  ;;  %v1392_v22 = vpop.f32.mrf.mxu1 }
 0x2dd   :  { %v1390_v19 = vadd.f32 %v1389_v1, %v1229_v5 }
 0x2de   :  { %v909_v15 = vpop.f32.mrf.mxu2 }
 0x2df   :  { %v1070_v29 = vpop.f32.mrf.mxu3  ;;  %1444 = vst.msk [vmem:[%s2324_s3 + $0x168] sm:$0xff] %vm1398_vm0, %v1390_v19  ;;  %v910_v59 = vadd.f32 %v909_v15, %v2375_v30 }
 0x2e1   :  { %v1071_v27 = vadd.f32 %v1070_v29, %v910_v59 }
 0x2e3   :  { %v1232_v0 = vadd.f32 %v1231_v46, %v1071_v27  ;;  %v1234_v56 = vpop.f32.mrf.mxu0  ;;  %v1395_v44 = vpop.f32.mrf.mxu1 }
 0x2e5   :  { %v1393_v43 = vadd.f32 %v1392_v22, %v1232_v0 }
 0x2e6   :  { %v912_v52 = vpop.f32.mrf.mxu2 }
 0x2e7   :  { %v1073_v24 = vpop.f32.mrf.mxu3  ;;  %1445 = vst.msk [vmem:[%s2324_s3 + $0x170] sm:$0xff] %vm1398_vm0, %v1393_v43  ;;  %v913_v58 = vadd.f32 %v912_v52, %v2376_v60 }
 0x2e9   :  { %v1074_v17 = vadd.f32 %v1073_v24, %v913_v58 }
 0x2eb   :  { %v1235_v8 = vadd.f32 %v1234_v56, %v1074_v17 }
 0x2ed   :  { %v1396_v53 = vadd.f32 %v1395_v44, %v1235_v8 }
 0x2ef   :  { %1446 = vst.msk [vmem:[%s2324_s3 + $0x178] sm:$0xff] %vm1398_vm0, %v1396_v53 }
 0x2f0   :  { %1451 = vsyncpa [#allocation3], 1 }
 0x2f1   :  { %1452 = vsyncpa [#allocation5], 1 }

</bundles_post_ra>
